<compile_context>
chip_gen: v5e
topology: v5e:2x2
jax: 0.10.0
libtpu: 0.0.40
codegen_flags: <defaults>
</compile_context>

<pallas_src>
import functools
import numpy as np
import jax
import jax.numpy as jnp
from jax.experimental import pallas as pl
from jax.experimental.pallas import tpu as pltpu


def _round_up(x, m):
    return ((x + m - 1) // m) * m


# ------------------------------ fused kernel --------------------------------

def _caption_kernel(cols_ref, cap_ref, sel_ref, padm_ref,
                    cw_ref, cb_ref, ew_ref, eb_ref,
                    tab_ref, wih_ref, bw_ref, wpk_ref,
                    dw_ref, db_ref,
                    o_ref, h_slab,
                    *, B, HW, Bp, S, L, H):
    f32 = jnp.float32
    bf16 = jnp.bfloat16
    LH = L * H

    # ---------------- EncoderCNN (stand-in trunk + Linear + BatchNorm1d) -----
    # conv (im2col matmul, K lane-padded to 128) + bias + ReLU.  Kept f32: the
    # B=2 BatchNorm downstream is ill-conditioned, bf16 here risks tolerance.
    conv = jnp.dot(cols_ref[...], cw_ref[...], preferred_element_type=f32)
    conv = jnp.maximum(conv + cb_ref[0], 0.0)                       # (B*HW, C)
    C = conv.shape[-1]
    # Global average pool as a sublane (XLU) reduction — no dense pool matrix.
    pooled = jnp.sum(conv.reshape(B, HW, C), axis=1) * (1.0 / HW)   # (B, C)
    # Linear + BatchNorm1d (training mode: batch stats, gamma=1, beta=0).
    y = jnp.dot(pooled, ew_ref[...], preferred_element_type=f32) + eb_ref[0]
    mean = jnp.mean(y, axis=0, keepdims=True)
    var = jnp.mean((y - mean) ** 2, axis=0, keepdims=True)
    feats = (y - mean) * jax.lax.rsqrt(var + 1e-5)                  # (B, E)
    # Sublane-pad the batch to Bp via a tiny selection matmul (pad rows = 0).
    feats_p = jnp.dot(padm_ref[...], feats, preferred_element_type=f32)  # (Bp, E)

    # ---------------- DecoderRNN (wavefront multi-layer RNN + vocab head) ----
    # Embedding lookup as a one-hot matmul; batch-pad slots carry sentinel V,
    # which selects a zero table row, so padded rows see zero inputs.
    ids = cap_ref[...]                                              # (T*Bp, 1)
    TBp = ids.shape[0]
    VpE = tab_ref.shape[0]
    onehot = (ids == jax.lax.broadcasted_iota(jnp.int32, (TBp, VpE), 1)).astype(bf16)
    emb = jnp.dot(onehot, tab_ref[...], preferred_element_type=f32)  # (T*Bp, E)

    # Hoisted layer-1 input projection for ALL timesteps, widened to L*H lanes
    # (wih_ref = [Wih1 | 0], bw_ref = [b1 | b2 | ... | bL]), so the per-step
    # body is a single (Bp, LH) @ (LH, LH) matmul + add + tanh.
    xp_emb = jnp.dot(emb.astype(bf16), wih_ref[...],
                     preferred_element_type=f32) + bw_ref[0]         # (T*Bp, LH)
    xp_feat = jnp.dot(feats_p.astype(bf16), wih_ref[...],
                      preferred_element_type=f32) + bw_ref[0]        # (Bp, LH)

    wpk = wpk_ref[...]                                               # (LH, LH) bf16
    lane = jax.lax.broadcasted_iota(jnp.int32, (Bp, LH), 1)
    tail = jnp.zeros((Bp, LH), f32) + bw_ref[0]          # drain steps past the sequence
    state = None
    # Wavefront over (time, layer): state slot l holds layer l+1's hidden at
    # time s - l, so every layer's recurrence shares one block matmul per step.
    for s in range(S + L - 1):
        if s == 0:
            xz = xp_feat                                  # x_0 = encoder features
        elif s < S:
            xz = xp_emb[(s - 1) * Bp:s * Bp, :]           # x_s = emb of caption token s-1
        else:
            xz = tail                                     # only upper-layer slots matter
        if state is None:
            pre = xz
        else:
            pre = xz + jnp.dot(state.astype(bf16), wpk, preferred_element_type=f32)
        nxt = jnp.tanh(pre)
        if s < L - 1:                                     # layers not started yet stay 0
            nxt = jnp.where(lane < (s + 1) * H, nxt, 0.0)
        state = nxt
        h_slab[pl.ds(s * Bp, Bp), :] = state              # per-step slab write (VMEM)

    # pack_padded_sequence row selection as a 0/1 matmul, then the vocab Linear.
    # dw_ref has zero rows for all non-top-layer slots -> no lane slicing needed.
    packed_h = jnp.dot(sel_ref[...], h_slab[...], preferred_element_type=f32)  # (Pp, LH)
    o_ref[...] = jnp.dot(packed_h.astype(bf16), dw_ref[...],
                         preferred_element_type=f32) + db_ref[0]               # (Pp, Vp)


# --------------------------------- wrapper ----------------------------------

def _pack_indices(lengths):
    """pack_padded_sequence(batch_first=True) ordering (lengths sorted desc)."""
    S = max(lengths)
    b_idx, t_idx = [], []
    for t in range(S):
        for b in range(len(lengths)):
            if lengths[b] > t:
                b_idx.append(b)
                t_idx.append(t)
    return np.array(b_idx), np.array(t_idx)


def caption_forward(params, rnn_params, images_nchw, captions, lengths):
    """CaptionCNNRNN forward: one fused Pallas call, lane-dense output slab."""
    f32, bf16 = jnp.float32, jnp.bfloat16
    conv_w, conv_b = params["conv_w"], params["conv_b"]
    enc_w, enc_b = params["enc_w"], params["enc_b"]
    table = params["embedding"]
    dec_w, dec_b = params["dec_w"], params["dec_b"]

    x = jnp.transpose(images_nchw, (0, 2, 3, 1))                 # NCHW -> NHWC
    B, Hi, Wi, Cin = x.shape
    KH, KW, _, C = conv_w.shape
    E = enc_w.shape[1]
    Hh, V = dec_w.shape
    L = len(rnn_params)
    T = captions.shape[1]
    S = T + 1
    HW = Hi * Wi
    Bp = _round_up(B, 8)             # sublane-padded batch
    K = KH * KW * Cin
    Kp = _round_up(K, 128)           # lane-dense im2col contraction dim
    Vp = _round_up(V, 128)           # lane-dense vocab output
    VpE = _round_up(V + 1, 128)      # one-hot width (sentinel V -> zero row)
    LH = L * Hh
    n_slab = (S + L - 1) * Bp

    # --- im2col rows, zero-padded to Kp lanes.
    # TODO(synk): the pretrained ResNet50 backbone cannot be reproduced
    # in-script; a deterministic 3x3-conv(pad=1)+ReLU+GAP trunk stands in, and
    # im2col is materialized wrapper-side (fine at toy size).
    xpad = jnp.pad(x, ((0, 0), (1, 1), (1, 1), (0, 0)))
    cols = jnp.concatenate(
        [xpad[:, kh:kh + Hi, kw:kw + Wi, :] for kh in range(KH) for kw in range(KW)],
        axis=-1).reshape(B * HW, K)
    cols_p = jnp.pad(cols, ((0, 0), (0, Kp - K)))
    conv_w_p = jnp.pad(conv_w.reshape(K, C), ((0, Kp - K), (0, 0)))

    # --- captions, time-major (T*Bp, 1); pad slots carry sentinel index V.
    cap_tm = jnp.pad(jnp.transpose(captions, (1, 0)).astype(jnp.int32),
                     ((0, 0), (0, Bp - B)), constant_values=V)
    cap_col = cap_tm.reshape(T * Bp, 1)
    # TODO(synk): Word2Vec-pretrained embedding load not reproducible in-script;
    # a plain embedding table is used.
    tab_p = jnp.pad(table, ((0, VpE - V), (0, 0))).astype(bf16)

    # --- weight prep (would be hoisted/cached once per model in real use) ---
    wih_wide = jnp.pad(rnn_params[0]["wih"], ((0, 0), (0, LH - Hh))).astype(bf16)
    b_wide = jnp.concatenate([lp["b"].reshape(1, Hh) for lp in rnn_params], axis=1)
    blocks = []
    for r in range(L):
        row = []
        for c in range(L):
            if c == r:
                row.append(rnn_params[r]["whh"])
            elif c == r + 1:
                row.append(rnn_params[c]["wih"])
            else:
                row.append(jnp.zeros((Hh, Hh), f32))
        blocks.append(row)
    wpk = jnp.block(blocks).astype(bf16)                          # (LH, LH)
    dec_w_big = jnp.pad(dec_w, ((LH - Hh, 0), (0, Vp - V))).astype(bf16)
    dec_b_p = jnp.pad(dec_b, (0, Vp - V)).reshape(1, Vp)

    # --- static pack_padded_sequence selection + batch-pad matrices ---
    b_idx, t_idx = _pack_indices(lengths)
    P = len(b_idx)
    Pp = _round_up(P, 8)
    sel_np = np.zeros((Pp, n_slab), np.float32)
    sel_np[np.arange(P), (t_idx + L - 1) * Bp + b_idx] = 1.0      # top layer at time t
    sel = jnp.asarray(sel_np)
    pad_mat = jnp.asarray(np.eye(Bp, B, dtype=np.float32))

    args = [cols_p, cap_col, sel, pad_mat,
            conv_w_p, conv_b.reshape(1, C), enc_w, enc_b.reshape(1, E),
            tab_p, wih_wide, b_wide, wpk, dec_w_big, dec_b_p]

    flops = 2 * (B * HW * Kp * C + B * C * E + Bp * B * E
                 + T * Bp * VpE * E + (T + 1) * Bp * E * LH
                 + (S + L - 1) * Bp * LH * LH
                 + Pp * n_slab * LH + Pp * LH * Vp)
    trans = (S + L - 1) * Bp * LH + E
    bytes_acc = sum(int(a.size) * np.dtype(a.dtype).itemsize for a in args)
    bytes_acc += Pp * Vp * 4

    out = pl.pallas_call(
        functools.partial(_caption_kernel, B=B, HW=HW, Bp=Bp, S=S, L=L, H=Hh),
        out_shape=jax.ShapeDtypeStruct((Pp, Vp), f32),
        scratch_shapes=[pltpu.VMEM((n_slab, LH), f32)],
        cost_estimate=pl.CostEstimate(flops=int(flops), transcendentals=int(trans),
                                      bytes_accessed=int(bytes_acc)),
    )(*args)
    # Output stays lane/sublane-dense until the very last consumer.
    return out[:P, :V]


# ------------------------------ pure-JAX reference ---------------------------

def caption_forward_ref(params, rnn_params, images_nchw, captions, lengths):
    x = jnp.transpose(images_nchw, (0, 2, 3, 1))
    B, H, W, Cin = x.shape
    KH, KW, _, Cout = params["conv_w"].shape
    xp = jnp.pad(x, ((0, 0), (1, 1), (1, 1), (0, 0)))
    cols = jnp.concatenate(
        [xp[:, kh:kh + H, kw:kw + W, :] for kh in range(KH) for kw in range(KW)],
        axis=-1).reshape(B, H * W, KH * KW * Cin)
    conv = jnp.maximum(
        cols @ params["conv_w"].reshape(KH * KW * Cin, Cout) + params["conv_b"], 0.0)
    feats = jnp.mean(conv, axis=1)
    y = feats @ params["enc_w"] + params["enc_b"]
    mean = y.mean(0, keepdims=True)
    var = ((y - mean) ** 2).mean(0, keepdims=True)
    feats = (y - mean) / jnp.sqrt(var + 1e-5)

    emb = jnp.take(params["embedding"], captions, axis=0)
    seq = jnp.concatenate([feats[:, None, :], emb], axis=1)
    x_tm = jnp.transpose(seq, (1, 0, 2))
    for lp in rnn_params:
        Hd = lp["whh"].shape[0]
        h = jnp.zeros((seq.shape[0], Hd), jnp.float32)
        outs = []
        for t in range(x_tm.shape[0]):
            h = jnp.tanh(x_tm[t] @ lp["wih"] + h @ lp["whh"] + lp["b"])
            outs.append(h)
        x_tm = jnp.stack(outs, axis=0)
    hiddens = jnp.transpose(x_tm, (1, 0, 2))
    b_idx, t_idx = _pack_indices(lengths)
    packed_h = hiddens[b_idx, t_idx]
    return packed_h @ params["dec_w"] + params["dec_b"]


# ----------------------------------- main ------------------------------------

if __name__ == "__main__":
    B, Cin, HWi = 2, 4, 16         # images: (B, Cin, HWi, HWi), NCHW like PyTorch
    T = 8                          # caption length -> RNN sequence length = T+1
    E = 32                         # embedding_size
    Hh = 32                        # hidden_size
    V = 50                         # vocab size
    INF = 32                       # encoder "infeature" (stand-in trunk channels)
    NUM_LAYERS = 2
    lengths = [9, 7]               # sorted descending (pack_padded_sequence req.)

    key = jax.random.PRNGKey(0)
    ks = jax.random.split(key, 16)
    params = {
        "conv_w": 0.1 * jax.random.normal(ks[0], (3, 3, Cin, INF), jnp.float32),
        "conv_b": 0.1 * jax.random.normal(ks[1], (INF,), jnp.float32),
        "enc_w": 0.1 * jax.random.normal(ks[2], (INF, E), jnp.float32),
        "enc_b": 0.1 * jax.random.normal(ks[3], (E,), jnp.float32),
        "embedding": jax.random.normal(ks[4], (V, E), jnp.float32),
        "dec_w": 0.1 * jax.random.normal(ks[5], (Hh, V), jnp.float32),
        "dec_b": 0.1 * jax.random.normal(ks[6], (V,), jnp.float32),
    }
    rnn_params = []
    in_dim = E
    for l in range(NUM_LAYERS):
        k1, k2, k3 = jax.random.split(ks[7 + l], 3)
        rnn_params.append({
            "wih": 0.2 * jax.random.normal(k1, (in_dim, Hh), jnp.float32),
            "whh": 0.2 * jax.random.normal(k2, (Hh, Hh), jnp.float32),
            "b": 0.1 * jax.random.normal(k3, (1, Hh), jnp.float32),  # b_ih + b_hh folded
        })
        in_dim = Hh

    images = jax.random.normal(ks[10], (B, Cin, HWi, HWi), jnp.float32)   # NCHW
    captions = jax.random.randint(ks[11], (B, T), 0, V, jnp.int32)

    out = caption_forward(params, rnn_params, images, captions, lengths)
    out = jax.block_until_ready(out)

    ref = caption_forward_ref(params, rnn_params, images, captions, lengths)
    assert out.shape == (sum(lengths), V), out.shape
    np.testing.assert_allclose(np.asarray(out), np.asarray(ref), rtol=2e-2, atol=2e-2)
    print("KERNEL_OK")
</pallas_src>

<mosaic_0001>
module attributes {stable_mosaic.version = 11 : i64} {
  func.func @_caption_kernel(%arg0: memref<512x128xf32, #tpu.memory_space<vmem>>, %arg1: memref<64x1xi32, #tpu.memory_space<vmem>>, %arg2: memref<16x80xf32, #tpu.memory_space<vmem>>, %arg3: memref<8x2xf32, #tpu.memory_space<vmem>>, %arg4: memref<128x32xf32, #tpu.memory_space<vmem>>, %arg5: memref<1x32xf32, #tpu.memory_space<vmem>>, %arg6: memref<32x32xf32, #tpu.memory_space<vmem>>, %arg7: memref<1x32xf32, #tpu.memory_space<vmem>>, %arg8: memref<128x32xbf16, #tpu.memory_space<vmem>>, %arg9: memref<32x64xbf16, #tpu.memory_space<vmem>>, %arg10: memref<1x64xf32, #tpu.memory_space<vmem>>, %arg11: memref<64x64xbf16, #tpu.memory_space<vmem>>, %arg12: memref<64x128xbf16, #tpu.memory_space<vmem>>, %arg13: memref<1x128xf32, #tpu.memory_space<vmem>>, %arg14: memref<16x128xf32, #tpu.memory_space<vmem>>, %arg15: memref<80x64xf32, #tpu.memory_space<vmem>>) attributes {dimension_semantics = [], scalar_prefetch = 0 : i64, scratch_operands = 1 : i64, tpu.core_type = #tpu.core_type<tc>} {
    %c0 = arith.constant 0 : index
    %c0_0 = arith.constant 0 : index
    %0 = vector.load %arg0[%c0, %c0_0] : memref<512x128xf32, #tpu.memory_space<vmem>>, vector<512x128xf32>
    %c0_1 = arith.constant 0 : index
    %c0_2 = arith.constant 0 : index
    %1 = vector.load %arg4[%c0_1, %c0_2] : memref<128x32xf32, #tpu.memory_space<vmem>>, vector<128x32xf32>
    %cst = arith.constant dense<0.000000e+00> : vector<512x32xf32>
    %2 = tpu.matmul %0, %1, %cst {dimension_numbers = #tpu.dot_dimension_numbers<[1], [0], [0], [1], [0, 0, 1, 1], [], []>} : vector<512x128xf32>, vector<128x32xf32>, vector<512x32xf32> -> vector<512x32xf32>
    %c0_3 = arith.constant 0 : index
    %c0_4 = arith.constant 0 : index
    %3 = vector.load %arg5[%c0_3, %c0_4] : memref<1x32xf32, #tpu.memory_space<vmem>>, vector<1x32xf32>
    %4 = vector.shape_cast %3 : vector<1x32xf32> to vector<32xf32>
    %5 = vector.shape_cast %4 : vector<32xf32> to vector<1x32xf32>
    %6 = vector.broadcast %5 : vector<1x32xf32> to vector<512x32xf32>
    %7 = arith.addf %2, %6 : vector<512x32xf32>
    %cst_5 = arith.constant 0.000000e+00 : f32
    %8 = vector.broadcast %cst_5 : f32 to vector<512x32xf32>
    %9 = arith.maximumf %7, %8 : vector<512x32xf32>
    %10 = vector.shape_cast %9 : vector<512x32xf32> to vector<2x256x32xf32>
    %cst_6 = arith.constant dense<0.000000e+00> : vector<2x32xf32>
    %11 = vector.multi_reduction <add>, %10, %cst_6 [1] : vector<2x256x32xf32> to vector<2x32xf32>
    %cst_7 = arith.constant 3.906250e-03 : f32
    %12 = vector.broadcast %cst_7 : f32 to vector<2x32xf32>
    %13 = arith.mulf %11, %12 : vector<2x32xf32>
    %c0_8 = arith.constant 0 : index
    %c0_9 = arith.constant 0 : index
    %14 = vector.load %arg6[%c0_8, %c0_9] : memref<32x32xf32, #tpu.memory_space<vmem>>, vector<32x32xf32>
    %cst_10 = arith.constant dense<0.000000e+00> : vector<2x32xf32>
    %15 = tpu.matmul %13, %14, %cst_10 {dimension_numbers = #tpu.dot_dimension_numbers<[1], [0], [0], [1], [0, 0, 1, 1], [], []>} : vector<2x32xf32>, vector<32x32xf32>, vector<2x32xf32> -> vector<2x32xf32>
    %c0_11 = arith.constant 0 : index
    %c0_12 = arith.constant 0 : index
    %16 = vector.load %arg7[%c0_11, %c0_12] : memref<1x32xf32, #tpu.memory_space<vmem>>, vector<1x32xf32>
    %17 = vector.shape_cast %16 : vector<1x32xf32> to vector<32xf32>
    %18 = vector.shape_cast %17 : vector<32xf32> to vector<1x32xf32>
    %19 = vector.broadcast %18 : vector<1x32xf32> to vector<2x32xf32>
    %20 = arith.addf %15, %19 : vector<2x32xf32>
    %cst_13 = arith.constant dense<0.000000e+00> : vector<32xf32>
    %21 = vector.multi_reduction <add>, %20, %cst_13 [0] : vector<2x32xf32> to vector<32xf32>
    %22 = vector.shape_cast %21 : vector<32xf32> to vector<1x32xf32>
    %cst_14 = arith.constant 2.000000e+00 : f32
    %23 = vector.broadcast %cst_14 : f32 to vector<1x32xf32>
    %24 = arith.divf %22, %23 : vector<1x32xf32>
    %25 = vector.broadcast %24 : vector<1x32xf32> to vector<2x32xf32>
    %26 = arith.subf %20, %25 : vector<2x32xf32>
    %27 = arith.mulf %26, %26 : vector<2x32xf32>
    %cst_15 = arith.constant dense<0.000000e+00> : vector<32xf32>
    %28 = vector.multi_reduction <add>, %27, %cst_15 [0] : vector<2x32xf32> to vector<32xf32>
    %29 = vector.shape_cast %28 : vector<32xf32> to vector<1x32xf32>
    %cst_16 = arith.constant 2.000000e+00 : f32
    %30 = vector.broadcast %cst_16 : f32 to vector<1x32xf32>
    %31 = arith.divf %29, %30 : vector<1x32xf32>
    %32 = vector.broadcast %24 : vector<1x32xf32> to vector<2x32xf32>
    %33 = arith.subf %20, %32 : vector<2x32xf32>
    %cst_17 = arith.constant 9.99999974E-6 : f32
    %34 = vector.broadcast %cst_17 : f32 to vector<1x32xf32>
    %35 = arith.addf %31, %34 : vector<1x32xf32>
    %36 = math.rsqrt %35 : vector<1x32xf32>
    %37 = vector.broadcast %36 : vector<1x32xf32> to vector<2x32xf32>
    %38 = arith.mulf %33, %37 : vector<2x32xf32>
    %c0_18 = arith.constant 0 : index
    %c0_19 = arith.constant 0 : index
    %39 = vector.load %arg3[%c0_18, %c0_19] : memref<8x2xf32, #tpu.memory_space<vmem>>, vector<8x2xf32>
    %cst_20 = arith.constant dense<0.000000e+00> : vector<8x32xf32>
    %40 = tpu.matmul %39, %38, %cst_20 {dimension_numbers = #tpu.dot_dimension_numbers<[1], [0], [0], [1], [0, 0, 1, 1], [], []>} : vector<8x2xf32>, vector<2x32xf32>, vector<8x32xf32> -> vector<8x32xf32>
    %c0_21 = arith.constant 0 : index
    %c0_22 = arith.constant 0 : index
    %41 = vector.load %arg1[%c0_21, %c0_22] : memref<64x1xi32, #tpu.memory_space<vmem>>, vector<64x1xi32>
    %42 = tpu.iota {dimensions = array<i32: 1>} : vector<64x128xi32>
    %43 = vector.broadcast %41 : vector<64x1xi32> to vector<64x128xi32>
    %44 = arith.cmpi eq, %43, %42 : vector<64x128xi32>
    %45 = arith.extui %44 : vector<64x128xi1> to vector<64x128xi32>
    %46 = arith.sitofp %45 : vector<64x128xi32> to vector<64x128xf32>
    %47 = arith.truncf %46 : vector<64x128xf32> to vector<64x128xbf16>
    %c0_23 = arith.constant 0 : index
    %c0_24 = arith.constant 0 : index
    %48 = vector.load %arg8[%c0_23, %c0_24] : memref<128x32xbf16, #tpu.memory_space<vmem>>, vector<128x32xbf16>
    %cst_25 = arith.constant dense<0.000000e+00> : vector<64x32xf32>
    %49 = tpu.matmul %47, %48, %cst_25 {dimension_numbers = #tpu.dot_dimension_numbers<[1], [0], [0], [1], [0, 0, 1, 1], [], []>} : vector<64x128xbf16>, vector<128x32xbf16>, vector<64x32xf32> -> vector<64x32xf32>
    %50 = arith.truncf %49 : vector<64x32xf32> to vector<64x32xbf16>
    %c0_26 = arith.constant 0 : index
    %c0_27 = arith.constant 0 : index
    %51 = vector.load %arg9[%c0_26, %c0_27] : memref<32x64xbf16, #tpu.memory_space<vmem>>, vector<32x64xbf16>
    %cst_28 = arith.constant dense<0.000000e+00> : vector<64x64xf32>
    %52 = tpu.matmul %50, %51, %cst_28 {dimension_numbers = #tpu.dot_dimension_numbers<[1], [0], [0], [1], [0, 0, 1, 1], [], []>} : vector<64x32xbf16>, vector<32x64xbf16>, vector<64x64xf32> -> vector<64x64xf32>
    %c0_29 = arith.constant 0 : index
    %c0_30 = arith.constant 0 : index
    %53 = vector.load %arg10[%c0_29, %c0_30] : memref<1x64xf32, #tpu.memory_space<vmem>>, vector<1x64xf32>
    %54 = vector.shape_cast %53 : vector<1x64xf32> to vector<64xf32>
    %55 = vector.shape_cast %54 : vector<64xf32> to vector<1x64xf32>
    %56 = vector.broadcast %55 : vector<1x64xf32> to vector<64x64xf32>
    %57 = arith.addf %52, %56 : vector<64x64xf32>
    %58 = arith.truncf %40 : vector<8x32xf32> to vector<8x32xbf16>
    %c0_31 = arith.constant 0 : index
    %c0_32 = arith.constant 0 : index
    %59 = vector.load %arg9[%c0_31, %c0_32] : memref<32x64xbf16, #tpu.memory_space<vmem>>, vector<32x64xbf16>
    %cst_33 = arith.constant dense<0.000000e+00> : vector<8x64xf32>
    %60 = tpu.matmul %58, %59, %cst_33 {dimension_numbers = #tpu.dot_dimension_numbers<[1], [0], [0], [1], [0, 0, 1, 1], [], []>} : vector<8x32xbf16>, vector<32x64xbf16>, vector<8x64xf32> -> vector<8x64xf32>
    %c0_34 = arith.constant 0 : index
    %c0_35 = arith.constant 0 : index
    %61 = vector.load %arg10[%c0_34, %c0_35] : memref<1x64xf32, #tpu.memory_space<vmem>>, vector<1x64xf32>
    %62 = vector.shape_cast %61 : vector<1x64xf32> to vector<64xf32>
    %63 = vector.shape_cast %62 : vector<64xf32> to vector<1x64xf32>
    %64 = vector.broadcast %63 : vector<1x64xf32> to vector<8x64xf32>
    %65 = arith.addf %60, %64 : vector<8x64xf32>
    %c0_36 = arith.constant 0 : index
    %c0_37 = arith.constant 0 : index
    %66 = vector.load %arg11[%c0_36, %c0_37] : memref<64x64xbf16, #tpu.memory_space<vmem>>, vector<64x64xbf16>
    %67 = tpu.iota {dimensions = array<i32: 1>} : vector<8x64xi32>
    %cst_38 = arith.constant 0.000000e+00 : f32
    %68 = vector.broadcast %cst_38 : f32 to vector<8x64xf32>
    %c0_39 = arith.constant 0 : index
    %c0_40 = arith.constant 0 : index
    %69 = vector.load %arg10[%c0_39, %c0_40] : memref<1x64xf32, #tpu.memory_space<vmem>>, vector<1x64xf32>
    %70 = vector.shape_cast %69 : vector<1x64xf32> to vector<64xf32>
    %71 = vector.shape_cast %70 : vector<64xf32> to vector<1x64xf32>
    %72 = vector.broadcast %71 : vector<1x64xf32> to vector<8x64xf32>
    %73 = arith.addf %68, %72 : vector<8x64xf32>
    %74 = math.tanh %65 : vector<8x64xf32>
    %c32_i32 = arith.constant 32 : i32
    %75 = vector.broadcast %c32_i32 : i32 to vector<8x64xi32>
    %76 = arith.cmpi slt, %67, %75 : vector<8x64xi32>
    %cst_41 = arith.constant 0.000000e+00 : f32
    %77 = vector.broadcast %cst_41 : f32 to vector<8x64xf32>
    %78 = arith.select %76, %74, %77 : vector<8x64xi1>, vector<8x64xf32>
    %c0_42 = arith.constant 0 : index
    %c0_43 = arith.constant 0 : index
    %79 = vector.load %arg15[%c0_42, %c0_43] : memref<80x64xf32, #tpu.memory_space<vmem>>, vector<8x64xf32>
    tpu.vector_store %arg15[%c0_42, %c0_43], %78 {strides = array<i32>} : memref<80x64xf32, #tpu.memory_space<vmem>>, vector<8x64xf32>,
    %80 = vector.extract_strided_slice %57 {offsets = [0, 0], sizes = [8, 64], strides = [1, 1]} : vector<64x64xf32> to vector<8x64xf32>
    %81 = arith.truncf %78 : vector<8x64xf32> to vector<8x64xbf16>
    %cst_44 = arith.constant dense<0.000000e+00> : vector<8x64xf32>
    %82 = tpu.matmul %81, %66, %cst_44 {dimension_numbers = #tpu.dot_dimension_numbers<[1], [0], [0], [1], [0, 0, 1, 1], [], []>} : vector<8x64xbf16>, vector<64x64xbf16>, vector<8x64xf32> -> vector<8x64xf32>
    %83 = arith.addf %80, %82 : vector<8x64xf32>
    %84 = math.tanh %83 : vector<8x64xf32>
    %c8 = arith.constant 8 : index
    %c0_45 = arith.constant 0 : index
    %85 = vector.load %arg15[%c8, %c0_45] : memref<80x64xf32, #tpu.memory_space<vmem>>, vector<8x64xf32>
    tpu.vector_store %arg15[%c8, %c0_45], %84 {strides = array<i32>} : memref<80x64xf32, #tpu.memory_space<vmem>>, vector<8x64xf32>,
    %86 = vector.extract_strided_slice %57 {offsets = [8, 0], sizes = [8, 64], strides = [1, 1]} : vector<64x64xf32> to vector<8x64xf32>
    %87 = arith.truncf %84 : vector<8x64xf32> to vector<8x64xbf16>
    %cst_46 = arith.constant dense<0.000000e+00> : vector<8x64xf32>
    %88 = tpu.matmul %87, %66, %cst_46 {dimension_numbers = #tpu.dot_dimension_numbers<[1], [0], [0], [1], [0, 0, 1, 1], [], []>} : vector<8x64xbf16>, vector<64x64xbf16>, vector<8x64xf32> -> vector<8x64xf32>
    %89 = arith.addf %86, %88 : vector<8x64xf32>
    %90 = math.tanh %89 : vector<8x64xf32>
    %c16 = arith.constant 16 : index
    %c0_47 = arith.constant 0 : index
    %91 = vector.load %arg15[%c16, %c0_47] : memref<80x64xf32, #tpu.memory_space<vmem>>, vector<8x64xf32>
    tpu.vector_store %arg15[%c16, %c0_47], %90 {strides = array<i32>} : memref<80x64xf32, #tpu.memory_space<vmem>>, vector<8x64xf32>,
    %92 = vector.extract_strided_slice %57 {offsets = [16, 0], sizes = [8, 64], strides = [1, 1]} : vector<64x64xf32> to vector<8x64xf32>
    %93 = arith.truncf %90 : vector<8x64xf32> to vector<8x64xbf16>
    %cst_48 = arith.constant dense<0.000000e+00> : vector<8x64xf32>
    %94 = tpu.matmul %93, %66, %cst_48 {dimension_numbers = #tpu.dot_dimension_numbers<[1], [0], [0], [1], [0, 0, 1, 1], [], []>} : vector<8x64xbf16>, vector<64x64xbf16>, vector<8x64xf32> -> vector<8x64xf32>
    %95 = arith.addf %92, %94 : vector<8x64xf32>
    %96 = math.tanh %95 : vector<8x64xf32>
    %c24 = arith.constant 24 : index
    %c0_49 = arith.constant 0 : index
    %97 = vector.load %arg15[%c24, %c0_49] : memref<80x64xf32, #tpu.memory_space<vmem>>, vector<8x64xf32>
    tpu.vector_store %arg15[%c24, %c0_49], %96 {strides = array<i32>} : memref<80x64xf32, #tpu.memory_space<vmem>>, vector<8x64xf32>,
    %98 = vector.extract_strided_slice %57 {offsets = [24, 0], sizes = [8, 64], strides = [1, 1]} : vector<64x64xf32> to vector<8x64xf32>
    %99 = arith.truncf %96 : vector<8x64xf32> to vector<8x64xbf16>
    %cst_50 = arith.constant dense<0.000000e+00> : vector<8x64xf32>
    %100 = tpu.matmul %99, %66, %cst_50 {dimension_numbers = #tpu.dot_dimension_numbers<[1], [0], [0], [1], [0, 0, 1, 1], [], []>} : vector<8x64xbf16>, vector<64x64xbf16>, vector<8x64xf32> -> vector<8x64xf32>
    %101 = arith.addf %98, %100 : vector<8x64xf32>
    %102 = math.tanh %101 : vector<8x64xf32>
    %c32 = arith.constant 32 : index
    %c0_51 = arith.constant 0 : index
    %103 = vector.load %arg15[%c32, %c0_51] : memref<80x64xf32, #tpu.memory_space<vmem>>, vector<8x64xf32>
    tpu.vector_store %arg15[%c32, %c0_51], %102 {strides = array<i32>} : memref<80x64xf32, #tpu.memory_space<vmem>>, vector<8x64xf32>,
    %104 = vector.extract_strided_slice %57 {offsets = [32, 0], sizes = [8, 64], strides = [1, 1]} : vector<64x64xf32> to vector<8x64xf32>
    %105 = arith.truncf %102 : vector<8x64xf32> to vector<8x64xbf16>
    %cst_52 = arith.constant dense<0.000000e+00> : vector<8x64xf32>
    %106 = tpu.matmul %105, %66, %cst_52 {dimension_numbers = #tpu.dot_dimension_numbers<[1], [0], [0], [1], [0, 0, 1, 1], [], []>} : vector<8x64xbf16>, vector<64x64xbf16>, vector<8x64xf32> -> vector<8x64xf32>
    %107 = arith.addf %104, %106 : vector<8x64xf32>
    %108 = math.tanh %107 : vector<8x64xf32>
    %c40 = arith.constant 40 : index
    %c0_53 = arith.constant 0 : index
    %109 = vector.load %arg15[%c40, %c0_53] : memref<80x64xf32, #tpu.memory_space<vmem>>, vector<8x64xf32>
    tpu.vector_store %arg15[%c40, %c0_53], %108 {strides = array<i32>} : memref<80x64xf32, #tpu.memory_space<vmem>>, vector<8x64xf32>,
    %110 = vector.extract_strided_slice %57 {offsets = [40, 0], sizes = [8, 64], strides = [1, 1]} : vector<64x64xf32> to vector<8x64xf32>
    %111 = arith.truncf %108 : vector<8x64xf32> to vector<8x64xbf16>
    %cst_54 = arith.constant dense<0.000000e+00> : vector<8x64xf32>
    %112 = tpu.matmul %111, %66, %cst_54 {dimension_numbers = #tpu.dot_dimension_numbers<[1], [0], [0], [1], [0, 0, 1, 1], [], []>} : vector<8x64xbf16>, vector<64x64xbf16>, vector<8x64xf32> -> vector<8x64xf32>
    %113 = arith.addf %110, %112 : vector<8x64xf32>
    %114 = math.tanh %113 : vector<8x64xf32>
    %c48 = arith.constant 48 : index
    %c0_55 = arith.constant 0 : index
    %115 = vector.load %arg15[%c48, %c0_55] : memref<80x64xf32, #tpu.memory_space<vmem>>, vector<8x64xf32>
    tpu.vector_store %arg15[%c48, %c0_55], %114 {strides = array<i32>} : memref<80x64xf32, #tpu.memory_space<vmem>>, vector<8x64xf32>,
    %116 = vector.extract_strided_slice %57 {offsets = [48, 0], sizes = [8, 64], strides = [1, 1]} : vector<64x64xf32> to vector<8x64xf32>
    %117 = arith.truncf %114 : vector<8x64xf32> to vector<8x64xbf16>
    %cst_56 = arith.constant dense<0.000000e+00> : vector<8x64xf32>
    %118 = tpu.matmul %117, %66, %cst_56 {dimension_numbers = #tpu.dot_dimension_numbers<[1], [0], [0], [1], [0, 0, 1, 1], [], []>} : vector<8x64xbf16>, vector<64x64xbf16>, vector<8x64xf32> -> vector<8x64xf32>
    %119 = arith.addf %116, %118 : vector<8x64xf32>
    %120 = math.tanh %119 : vector<8x64xf32>
    %c56 = arith.constant 56 : index
    %c0_57 = arith.constant 0 : index
    %121 = vector.load %arg15[%c56, %c0_57] : memref<80x64xf32, #tpu.memory_space<vmem>>, vector<8x64xf32>
    tpu.vector_store %arg15[%c56, %c0_57], %120 {strides = array<i32>} : memref<80x64xf32, #tpu.memory_space<vmem>>, vector<8x64xf32>,
    %122 = vector.extract_strided_slice %57 {offsets = [56, 0], sizes = [8, 64], strides = [1, 1]} : vector<64x64xf32> to vector<8x64xf32>
    %123 = arith.truncf %120 : vector<8x64xf32> to vector<8x64xbf16>
    %cst_58 = arith.constant dense<0.000000e+00> : vector<8x64xf32>
    %124 = tpu.matmul %123, %66, %cst_58 {dimension_numbers = #tpu.dot_dimension_numbers<[1], [0], [0], [1], [0, 0, 1, 1], [], []>} : vector<8x64xbf16>, vector<64x64xbf16>, vector<8x64xf32> -> vector<8x64xf32>
    %125 = arith.addf %122, %124 : vector<8x64xf32>
    %126 = math.tanh %125 : vector<8x64xf32>
    %c64 = arith.constant 64 : index
    %c0_59 = arith.constant 0 : index
    %127 = vector.load %arg15[%c64, %c0_59] : memref<80x64xf32, #tpu.memory_space<vmem>>, vector<8x64xf32>
    tpu.vector_store %arg15[%c64, %c0_59], %126 {strides = array<i32>} : memref<80x64xf32, #tpu.memory_space<vmem>>, vector<8x64xf32>,
    %128 = arith.truncf %126 : vector<8x64xf32> to vector<8x64xbf16>
    %cst_60 = arith.constant dense<0.000000e+00> : vector<8x64xf32>
    %129 = tpu.matmul %128, %66, %cst_60 {dimension_numbers = #tpu.dot_dimension_numbers<[1], [0], [0], [1], [0, 0, 1, 1], [], []>} : vector<8x64xbf16>, vector<64x64xbf16>, vector<8x64xf32> -> vector<8x64xf32>
    %130 = arith.addf %73, %129 : vector<8x64xf32>
    %131 = math.tanh %130 : vector<8x64xf32>
    %c72 = arith.constant 72 : index
    %c0_61 = arith.constant 0 : index
    %132 = vector.load %arg15[%c72, %c0_61] : memref<80x64xf32, #tpu.memory_space<vmem>>, vector<8x64xf32>
    tpu.vector_store %arg15[%c72, %c0_61], %131 {strides = array<i32>} : memref<80x64xf32, #tpu.memory_space<vmem>>, vector<8x64xf32>,
    %c0_62 = arith.constant 0 : index
    %c0_63 = arith.constant 0 : index
    %133 = vector.load %arg2[%c0_62, %c0_63] : memref<16x80xf32, #tpu.memory_space<vmem>>, vector<16x80xf32>
    %c0_64 = arith.constant 0 : index
    %c0_65 = arith.constant 0 : index
    %134 = vector.load %arg15[%c0_64, %c0_65] : memref<80x64xf32, #tpu.memory_space<vmem>>, vector<80x64xf32>
    %cst_66 = arith.constant dense<0.000000e+00> : vector<16x64xf32>
    %135 = tpu.matmul %133, %134, %cst_66 {dimension_numbers = #tpu.dot_dimension_numbers<[1], [0], [0], [1], [0, 0, 1, 1], [], []>} : vector<16x80xf32>, vector<80x64xf32>, vector<16x64xf32> -> vector<16x64xf32>
    %136 = arith.truncf %135 : vector<16x64xf32> to vector<16x64xbf16>
    %c0_67 = arith.constant 0 : index
    %c0_68 = arith.constant 0 : index
    %137 = vector.load %arg12[%c0_67, %c0_68] : memref<64x128xbf16, #tpu.memory_space<vmem>>, vector<64x128xbf16>
    %cst_69 = arith.constant dense<0.000000e+00> : vector<16x128xf32>
    %138 = tpu.matmul %136, %137, %cst_69 {dimension_numbers = #tpu.dot_dimension_numbers<[1], [0], [0], [1], [0, 0, 1, 1], [], []>} : vector<16x64xbf16>, vector<64x128xbf16>, vector<16x128xf32> -> vector<16x128xf32>
    %c0_70 = arith.constant 0 : index
    %c0_71 = arith.constant 0 : index
    %139 = vector.load %arg13[%c0_70, %c0_71] : memref<1x128xf32, #tpu.memory_space<vmem>>, vector<1x128xf32>
    %140 = vector.shape_cast %139 : vector<1x128xf32> to vector<128xf32>
    %141 = vector.shape_cast %140 : vector<128xf32> to vector<1x128xf32>
    %142 = vector.broadcast %141 : vector<1x128xf32> to vector<16x128xf32>
    %143 = arith.addf %138, %142 : vector<16x128xf32>
    %c0_72 = arith.constant 0 : index
    %c0_73 = arith.constant 0 : index
    %144 = vector.load %arg14[%c0_72, %c0_73] : memref<16x128xf32, #tpu.memory_space<vmem>>, vector<16x128xf32>
    tpu.vector_store %arg14[%c0_72, %c0_73], %143 {strides = array<i32>} : memref<16x128xf32, #tpu.memory_space<vmem>>, vector<16x128xf32>,
    return
  }
}

</mosaic_0001>

<bundles_post_ra>
// kernel: tpu_custom_call.1
= control target key start
LH: loop header
LB: loop body
LE: loop exit
PB: predicated region body
PF: predicated region fallthrough
CT: control target
= control target key end

     0   :  { %19 = vsyncpa [#allocation4], 0  ;;  %s2041_s0 = inlined_call_operand.hbm [shape: f32[512,128], index: 0, kind: input, shape index: {}]   ;;  %s2042_s1 = inlined_call_operand.vmem [shape: s32[64,1], index: 1, kind: input, shape index: {}]   ;;  %s2043_s2 = inlined_call_operand.vmem [shape: f32[16,80], index: 2, kind: input, shape index: {}]   ;;  %s2044_s3 = inlined_call_operand.vmem [shape: f32[8,2], index: 3, kind: input, shape index: {}]   ;;  %s2045_s4 = inlined_call_operand.vmem [shape: f32[128,32], index: 4, kind: input, shape index: {}]   ;;  %s2046_s5 = inlined_call_operand.vmem [shape: f32[1,32], index: 5, kind: input, shape index: {}]   ;;  %s2047_s6 = inlined_call_operand.vmem [shape: f32[32,32], index: 6, kind: input, shape index: {}]   ;;  %s2048_s7 = inlined_call_operand.vmem [shape: f32[1,32], index: 7, kind: input, shape index: {}]   ;;  %s2049_s8 = inlined_call_operand.vmem [shape: bf16[128,32], index: 8, kind: input, shape index: {}]   ;;  %s2050_s9 = inlined_call_operand.vmem [shape: bf16[32,64], index: 9, kind: input, shape index: {}]   ;;  %s2051_s10 = inlined_call_operand.vmem [shape: f32[1,64], index: 10, kind: input, shape index: {}]   ;;  %s2052_s11 = inlined_call_operand.vmem [shape: bf16[64,64], index: 11, kind: input, shape index: {}]   ;;  %s2053_s12 = inlined_call_operand.vmem [shape: bf16[64,128], index: 12, kind: input, shape index: {}]   ;;  %s2054_s13 = inlined_call_operand.vmem [shape: f32[1,128], index: 13, kind: input, shape index: {}]   ;;  %s2055_s14 = inlined_call_operand.hbm [shape: f32[16,128], index: 14, kind: output, shape index: {}]  }
   0x1   :  { %20 = vsyncpa [#allocation5], 0  ;;  %s25_s15 = sshll.u32 %s2041_s0, 4  ;;  %s1500_s16 = smov [#allocation3]   ;;  %s26_s15 = int_to_ptr.hbm [resolvable:$true] %s25_s15 }
   0x2   :  { %s27_s17 = sshll.u32 %s1500_s16, 4  ;;  %s1501_s18 = smov 128   ;;  %s28_s17 = int_to_ptr.vmem [resolvable:$true] %s27_s17 }
   0x3   :  { %s1502_s19 = smov 8  }
   0x4   :  { %33 = dma.hbm_to_vmem [thread:$0]  %s26_s15, 8192, %s28_s17, [#allocation4], %s1501_s18, %s1501_s18, %s1502_s19  }
   0x5   :  { %1496 = dma.done.wait [#allocation4], 8192  }
   0x6   :  { %1497 = vsyncadd [#allocation4], 4294959104  ;;  %v144_v0 = vld [vmem:[%s2045_s4 + $0x78] sm:$0xff]  ;;  %v143_v1 = vld [vmem:[%s2045_s4 + $0x70] sm:$0xff]  ;;  %vm422_vm0 = vcmask 261120   ;;  %vm573_vm1 = vcmask 1041409  }
   0x7   :  { %149 = vmatpush.msra.mxu0 %v144_v0  ;;  %1362 = vmatpush.msra.mxu1 %v144_v0  ;;  %v142_v2 = vld [vmem:[%s2045_s4 + $0x68] sm:$0xff]  ;;  %v141_v3 = vld [vmem:[%s2045_s4 + $0x60] sm:$0xff]  ;;  %v140_v4 = vld [vmem:[%s2045_s4 + $0x58] sm:$0xff]  ;;  %vm597_vm2 = vcmask 254976   ;;  %vm640_vm7 = vcmask 1041408   ;;  %vm636_vm8 = vcmask 15360  }
   0x8   :  { %1364 = vmatpush.msra.mxu3 %v144_v0  ;;  %1363 = vmatpush.msra.mxu2 %v144_v0  ;;  %v139_v5 = vld [vmem:[%s2045_s4 + $0x50] sm:$0xff]  ;;  %v138_v6 = vld [vmem:[%s2045_s4 + $0x48] sm:$0xff]  ;;  %v137_v7 = vld [vmem:[%s2045_s4 + $0x40] sm:$0xff] }
   0x9   :  { %150 = vmatpush.msra.mxu0 %v143_v1  ;;  %1365 = vmatpush.msra.mxu1 %v143_v1  ;;  %v136_v8 = vld [vmem:[%s2045_s4 + $0x38] sm:$0xff]  ;;  %v135_v9 = vld [vmem:[%s2045_s4 + $0x30] sm:$0xff]  ;;  %v134_v10 = vld [vmem:[%s2045_s4 + $0x28] sm:$0xff] }
   0xa   :  { %1367 = vmatpush.msra.mxu3 %v143_v1  ;;  %1366 = vmatpush.msra.mxu2 %v143_v1  ;;  %v133_v11 = vld [vmem:[%s2045_s4 + $0x20] sm:$0xff]  ;;  %v132_v12 = vld [vmem:[%s2045_s4 + $0x18] sm:$0xff]  ;;  %v131_v13 = vld [vmem:[%s2045_s4 + $0x10] sm:$0xff] }
   0xb   :  { %151 = vmatpush.msra.mxu0 %v142_v2  ;;  %1368 = vmatpush.msra.mxu1 %v142_v2  ;;  %v130_v14 = vld [vmem:[%s2045_s4 + $0x8] sm:$0xff]  ;;  %v129_v15 = vld [vmem:[%s2045_s4] sm:$0xff]  ;;  %v65_v16 = vld [vmem:[#allocation3] sm:$0xff] }
   0xc   :  { %1370 = vmatpush.msra.mxu3 %v142_v2  ;;  %1369 = vmatpush.msra.mxu2 %v142_v2  ;;  %v91_v17 = vld [vmem:[#allocation3 + $0xd0] sm:$0xff]  ;;  %v114_v18 = vld [vmem:[#allocation3 + $0x188] sm:$0xff]  ;;  %v92_v21 = vld [vmem:[#allocation3 + $0xd8] sm:$0xff] }
   0xd   :  { %152 = vmatpush.msra.mxu0 %v141_v3  ;;  %1371 = vmatpush.msra.mxu1 %v141_v3  ;;  %v103_v19 = vld [vmem:[#allocation3 + $0x130] sm:$0xff]  ;;  %v66_v20 = vld [vmem:[#allocation3 + $0x8] sm:$0xff]  ;;  %v104_v23 = vld [vmem:[#allocation3 + $0x138] sm:$0xff] }
   0xe   :  { %1373 = vmatpush.msra.mxu3 %v141_v3  ;;  %1372 = vmatpush.msra.mxu2 %v141_v3  ;;  %v115_v22 = vld [vmem:[#allocation3 + $0x190] sm:$0xff]  ;;  %v93_v25 = vld [vmem:[#allocation3 + $0xe0] sm:$0xff]  ;;  %v116_v26 = vld [vmem:[#allocation3 + $0x198] sm:$0xff] }
   0xf   :  { %153 = vmatpush.msra.mxu0 %v140_v4  ;;  %1374 = vmatpush.msra.mxu1 %v140_v4  ;;  %v67_v24 = vld [vmem:[#allocation3 + $0x10] sm:$0xff]  ;;  %v105_v27 = vld [vmem:[#allocation3 + $0x140] sm:$0xff]  ;;  %v68_v28 = vld [vmem:[#allocation3 + $0x18] sm:$0xff] }
  0x10   :  { %1376 = vmatpush.msra.mxu3 %v140_v4  ;;  %1375 = vmatpush.msra.mxu2 %v140_v4  ;;  %v94_v29 = vld [vmem:[#allocation3 + $0xe8] sm:$0xff]  ;;  %v117_v30 = vld [vmem:[#allocation3 + $0x1a0] sm:$0xff]  ;;  %v95_v33 = vld [vmem:[#allocation3 + $0xf0] sm:$0xff] }
  0x11   :  { %154 = vmatpush.msra.mxu0 %v139_v5  ;;  %1377 = vmatpush.msra.mxu1 %v139_v5  ;;  %v106_v31 = vld [vmem:[#allocation3 + $0x148] sm:$0xff]  ;;  %v69_v32 = vld [vmem:[#allocation3 + $0x20] sm:$0xff]  ;;  %v107_v35 = vld [vmem:[#allocation3 + $0x150] sm:$0xff] }
  0x12   :  { %1379 = vmatpush.msra.mxu3 %v139_v5  ;;  %1378 = vmatpush.msra.mxu2 %v139_v5  ;;  %v118_v34 = vld [vmem:[#allocation3 + $0x1a8] sm:$0xff]  ;;  %v96_v37 = vld [vmem:[#allocation3 + $0xf8] sm:$0xff]  ;;  %v119_v38 = vld [vmem:[#allocation3 + $0x1b0] sm:$0xff] }
  0x13   :  { %155 = vmatpush.msra.mxu0 %v138_v6  ;;  %1380 = vmatpush.msra.mxu1 %v138_v6  ;;  %v70_v36 = vld [vmem:[#allocation3 + $0x28] sm:$0xff]  ;;  %v108_v39 = vld [vmem:[#allocation3 + $0x158] sm:$0xff]  ;;  %v71_v40 = vld [vmem:[#allocation3 + $0x30] sm:$0xff] }
  0x14   :  { %1382 = vmatpush.msra.mxu3 %v138_v6  ;;  %1381 = vmatpush.msra.mxu2 %v138_v6  ;;  %v97_v41 = vld [vmem:[#allocation3 + $0x100] sm:$0xff]  ;;  %v120_v42 = vld [vmem:[#allocation3 + $0x1b8] sm:$0xff]  ;;  %v98_v45 = vld [vmem:[#allocation3 + $0x108] sm:$0xff] }
  0x15   :  { %156 = vmatpush.msra.mxu0 %v137_v7  ;;  %1383 = vmatpush.msra.mxu1 %v137_v7  ;;  %v109_v43 = vld [vmem:[#allocation3 + $0x160] sm:$0xff]  ;;  %v72_v44 = vld [vmem:[#allocation3 + $0x38] sm:$0xff]  ;;  %v110_v47 = vld [vmem:[#allocation3 + $0x168] sm:$0xff] }
  0x16   :  { %1385 = vmatpush.msra.mxu3 %v137_v7  ;;  %1384 = vmatpush.msra.mxu2 %v137_v7  ;;  %v121_v46 = vld [vmem:[#allocation3 + $0x1c0] sm:$0xff]  ;;  %v99_v49 = vld [vmem:[#allocation3 + $0x110] sm:$0xff]  ;;  %v122_v50 = vld [vmem:[#allocation3 + $0x1c8] sm:$0xff] }
  0x17   :  { %157 = vmatpush.msra.mxu0 %v136_v8  ;;  %1386 = vmatpush.msra.mxu1 %v136_v8  ;;  %v73_v48 = vld [vmem:[#allocation3 + $0x40] sm:$0xff]  ;;  %v111_v51 = vld [vmem:[#allocation3 + $0x170] sm:$0xff]  ;;  %v74_v52 = vld [vmem:[#allocation3 + $0x48] sm:$0xff] }
  0x18   :  { %1388 = vmatpush.msra.mxu3 %v136_v8  ;;  %1387 = vmatpush.msra.mxu2 %v136_v8  ;;  %v100_v53 = vld [vmem:[#allocation3 + $0x118] sm:$0xff]  ;;  %v123_v54 = vld [vmem:[#allocation3 + $0x1d0] sm:$0xff]  ;;  %v101_v57 = vld [vmem:[#allocation3 + $0x120] sm:$0xff] }
  0x19   :  { %158 = vmatpush.msra.mxu0 %v135_v9  ;;  %1389 = vmatpush.msra.mxu1 %v135_v9  ;;  %v112_v55 = vld [vmem:[#allocation3 + $0x178] sm:$0xff]  ;;  %v75_v56 = vld [vmem:[#allocation3 + $0x50] sm:$0xff]  ;;  %v113_v59 = vld [vmem:[#allocation3 + $0x180] sm:$0xff] }
  0x1a   :  { %1391 = vmatpush.msra.mxu3 %v135_v9  ;;  %1390 = vmatpush.msra.mxu2 %v135_v9  ;;  %v124_v58 = vld [vmem:[#allocation3 + $0x1d8] sm:$0xff]  ;;  %v102_v61 = vld [vmem:[#allocation3 + $0x128] sm:$0xff]  ;;  %v125_v62 = vld [vmem:[#allocation3 + $0x1e0] sm:$0xff] }
  0x1b   :  { %159 = vmatpush.msra.mxu0 %v134_v10  ;;  %1392 = vmatpush.msra.mxu1 %v134_v10  ;;  %v76_v60 = vld [vmem:[#allocation3 + $0x58] sm:$0xff]  ;;  %v77_v63 = vld [vmem:[#allocation3 + $0x60] sm:$0xff]  ;;  %v126_v0 = vld [vmem:[#allocation3 + $0x1e8] sm:$0xff] }
  0x1c   :  { %1394 = vmatpush.msra.mxu3 %v134_v10  ;;  %1393 = vmatpush.msra.mxu2 %v134_v10  ;;  %v78_v1 = vld [vmem:[#allocation3 + $0x68] sm:$0xff]  ;;  %v127_v2 = vld [vmem:[#allocation3 + $0x1f0] sm:$0xff]  ;;  %v128_v4 = vld [vmem:[#allocation3 + $0x1f8] sm:$0xff] }
  0x1d   :  { %160 = vmatpush.msra.mxu0 %v133_v11  ;;  %1395 = vmatpush.msra.mxu1 %v133_v11  ;;  %v79_v3 = vld [vmem:[#allocation3 + $0x70] sm:$0xff]  ;;  %v80_v5 = vld [vmem:[#allocation3 + $0x78] sm:$0xff]  ;;  %v81_v8 = vld [vmem:[#allocation3 + $0x80] sm:$0xff] }
  0x1e   :  { %1397 = vmatpush.msra.mxu3 %v133_v11  ;;  %1396 = vmatpush.msra.mxu2 %v133_v11  ;;  %v82_v11 = vld [vmem:[#allocation3 + $0x88] sm:$0xff] }
  0x1f   :  { %161 = vmatpush.msra.mxu0 %v132_v12  ;;  %1398 = vmatpush.msra.mxu1 %v132_v12 }
  0x20   :  { %1400 = vmatpush.msra.mxu3 %v132_v12  ;;  %1399 = vmatpush.msra.mxu2 %v132_v12 }
  0x21   :  { %162 = vmatpush.msra.mxu0 %v131_v13  ;;  %1401 = vmatpush.msra.mxu1 %v131_v13 }
  0x22   :  { %1403 = vmatpush.msra.mxu3 %v131_v13  ;;  %1402 = vmatpush.msra.mxu2 %v131_v13 }
  0x23   :  { %163 = vmatpush.msra.mxu0 %v130_v14  ;;  %1404 = vmatpush.msra.mxu1 %v130_v14 }
  0x24   :  { %1406 = vmatpush.msra.mxu3 %v130_v14  ;;  %1405 = vmatpush.msra.mxu2 %v130_v14 }
  0x25   :  { %164 = vmatpush.msra.mxu0 %v129_v15  ;;  %1407 = vmatpush.msra.mxu1 %v129_v15 }
  0x26   :  { %165 = vmatmul.f32.vlgmr.msra.gmra.mxu0 %v65_v16  ;;  %243 = vmatmul.f32.vlgmr.msra.gmra.mxu1 %v91_v17  ;;  %v1649_v17 = vld [vmem:[%s2046_s5] ss:$0 sm:$0xff] }
  0x27   :  { %1409 = vmatpush.msra.mxu3 %v129_v15  ;;  %1408 = vmatpush.msra.mxu2 %v129_v15  ;;  %v83_v15 = vld [vmem:[#allocation3 + $0x90] sm:$0xff] }
  0x28   :  { %312 = vmatmul.f32.vlgmr.msra.gmra.mxu3 %v114_v18  ;;  %279 = vmatmul.f32.vlgmr.msra.gmra.mxu2 %v103_v19 }
  0x2e   :  { %168 = vmatmul.f32.gmra.mxu0 %v66_v20  ;;  %246 = vmatmul.f32.gmra.mxu1 %v92_v21 }
  0x30   :  { %315 = vmatmul.f32.gmra.mxu3 %v115_v22  ;;  %282 = vmatmul.f32.gmra.mxu2 %v104_v23  ;;  %v84_v23 = vld [vmem:[#allocation3 + $0x98] sm:$0xff] }
  0x36   :  { %171 = vmatmul.f32.gmra.mxu0 %v67_v24  ;;  %249 = vmatmul.f32.gmra.mxu1 %v93_v25 }
  0x38   :  { %318 = vmatmul.f32.gmra.mxu3 %v116_v26  ;;  %285 = vmatmul.f32.gmra.mxu2 %v105_v27 }
  0x3e   :  { %174 = vmatmul.f32.gmra.mxu0 %v68_v28  ;;  %252 = vmatmul.f32.gmra.mxu1 %v94_v29 }
  0x40   :  { %321 = vmatmul.f32.gmra.mxu3 %v117_v30  ;;  %288 = vmatmul.f32.gmra.mxu2 %v106_v31 }
  0x46   :  { %177 = vmatmul.f32.gmra.mxu0 %v69_v32  ;;  %255 = vmatmul.f32.gmra.mxu1 %v95_v33 }
  0x48   :  { %324 = vmatmul.f32.gmra.mxu3 %v118_v34  ;;  %291 = vmatmul.f32.gmra.mxu2 %v107_v35 }
  0x4e   :  { %180 = vmatmul.f32.gmra.mxu0 %v70_v36  ;;  %258 = vmatmul.f32.gmra.mxu1 %v96_v37  ;;  %v85_v36 = vld [vmem:[#allocation3 + $0xa0] sm:$0xff] }
  0x50   :  { %327 = vmatmul.f32.gmra.mxu3 %v119_v38  ;;  %294 = vmatmul.f32.gmra.mxu2 %v108_v39 }
  0x56   :  { %183 = vmatmul.f32.gmra.mxu0 %v71_v40  ;;  %261 = vmatmul.f32.gmra.mxu1 %v97_v41 }
  0x58   :  { %330 = vmatmul.f32.gmra.mxu3 %v120_v42  ;;  %297 = vmatmul.f32.gmra.mxu2 %v109_v43 }
  0x5e   :  { %186 = vmatmul.f32.gmra.mxu0 %v72_v44  ;;  %264 = vmatmul.f32.gmra.mxu1 %v98_v45 }
  0x60   :  { %333 = vmatmul.f32.gmra.mxu3 %v121_v46  ;;  %300 = vmatmul.f32.gmra.mxu2 %v110_v47  ;;  %v86_v47 = vld [vmem:[#allocation3 + $0xa8] sm:$0xff] }
  0x66   :  { %189 = vmatmul.f32.gmra.mxu0 %v73_v48  ;;  %267 = vmatmul.f32.gmra.mxu1 %v99_v49 }
  0x68   :  { %336 = vmatmul.f32.gmra.mxu3 %v122_v50  ;;  %303 = vmatmul.f32.gmra.mxu2 %v111_v51 }
  0x6e   :  { %192 = vmatmul.f32.gmra.mxu0 %v74_v52  ;;  %270 = vmatmul.f32.gmra.mxu1 %v100_v53 }
  0x70   :  { %339 = vmatmul.f32.gmra.mxu3 %v123_v54  ;;  %306 = vmatmul.f32.gmra.mxu2 %v112_v55  ;;  %v87_v55 = vld [vmem:[#allocation3 + $0xb0] sm:$0xff] }
  0x76   :  { %195 = vmatmul.f32.gmra.mxu0 %v75_v56  ;;  %273 = vmatmul.f32.gmra.mxu1 %v101_v57 }
  0x78   :  { %342 = vmatmul.f32.gmra.mxu3 %v124_v58  ;;  %309 = vmatmul.f32.gmra.mxu2 %v113_v59 }
  0x7e   :  { %198 = vmatmul.f32.gmra.mxu0 %v76_v60  ;;  %276 = vmatmul.f32.gmra.mxu1 %v102_v61 }
  0x80   :  { %345 = vmatmul.f32.gmra.mxu3 %v125_v62 }
  0x86   :  { %201 = vmatmul.f32.gmra.mxu0 %v77_v63 }
  0x88   :  { %348 = vmatmul.f32.gmra.mxu3 %v126_v0  ;;  %v88_v0 = vld [vmem:[#allocation3 + $0xb8] sm:$0xff] }
  0x8e   :  { %204 = vmatmul.f32.gmra.mxu0 %v78_v1 }
  0x90   :  { %351 = vmatmul.f32.gmra.mxu3 %v127_v2 }
  0x96   :  { %207 = vmatmul.f32.gmra.mxu0 %v79_v3 }
  0x98   :  { %354 = vmatmul.f32.gmra.mxu3 %v128_v4 }
  0x9e   :  { %210 = vmatmul.f32.gmra.mxu0 %v80_v5 }
  0xa3   :  { %v166_v6 = vpop.f32.mrf.mxu0  ;;  %v1636_v7 = vpop.f32.mrf.mxu1 }
  0xa4   :  { %v167_v19 = vadd.f32 %v1649_v17, %v166_v6 }
  0xa6   :  { %213 = vmatmul.f32.gmra.mxu0 %v81_v8  ;;  %v358_v27 = vmax.f32 %v167_v19, 0.0 }
  0xa8   :  { %v423_v31 = vsel %vm422_vm0, %v358_v27, 0.0 }
  0xab   :  { %v169_v9 = vpop.f32.mrf.mxu0  ;;  %v1638_v10 = vpop.f32.mrf.mxu1 }
  0xac   :  { %v1640_v12 = vpop.f32.mrf.mxu2  ;;  %v170_v18 = vadd.f32 %v1649_v17, %v169_v9  ;;  %v1675_v56 = vpop.f32.mrf.mxu3 }
  0xae   :  { %216 = vmatmul.f32.gmra.mxu0 %v82_v11  ;;  %v359_v24 = vmax.f32 %v170_v18, 0.0  ;;  %v89_v11 = vld [vmem:[#allocation3 + $0xc0] sm:$0xff] }
  0xb0   :  { %v424_v29 = vsel %vm422_vm0, %v359_v24, 0.0 }
  0xb1   :  { %v425_v33 = vadd.f32 %v424_v29, %v423_v31  ;;  %v90_v31 = vld [vmem:[#allocation3 + $0xc8] sm:$0xff] }
  0xb3   :  { %v172_v13 = vpop.f32.mrf.mxu0  ;;  %v1642_v14 = vpop.f32.mrf.mxu1 }
  0xb4   :  { %v1644_v16 = vpop.f32.mrf.mxu2  ;;  %v173_v20 = vadd.f32 %v1649_v17, %v172_v13  ;;  %v1682_v2 = vpop.f32.mrf.mxu3 }
  0xb6   :  { %219 = vmatmul.f32.gmra.mxu0 %v83_v15  ;;  %v360_v28 = vmax.f32 %v173_v20, 0.0 }
  0xb8   :  { %v426_v32 = vsel %vm422_vm0, %v360_v28, 0.0 }
  0xb9   :  { %v427_v40 = vadd.f32 %v426_v32, %v425_v33 }
  0xbb   :  { %v175_v21 = vpop.f32.mrf.mxu0  ;;  %v1654_v22 = vpop.f32.mrf.mxu1 }
  0xbc   :  { %v176_v25 = vadd.f32 %v1649_v17, %v175_v21  ;;  %v1657_v26 = vpop.f32.mrf.mxu2  ;;  %v1690_v20 = vpop.f32.mrf.mxu3 }
  0xbe   :  { %222 = vmatmul.f32.gmra.mxu0 %v84_v23  ;;  %v361_v30 = vmax.f32 %v176_v25, 0.0 }
  0xc0   :  { %v428_v37 = vsel %vm422_vm0, %v361_v30, 0.0 }
  0xc1   :  { %v429_v42 = vadd.f32 %v428_v37, %v427_v40 }
  0xc3   :  { %v178_v34 = vpop.f32.mrf.mxu0  ;;  %v1662_v35 = vpop.f32.mrf.mxu1 }
  0xc4   :  { %v179_v38 = vadd.f32 %v1649_v17, %v178_v34  ;;  %v1666_v39 = vpop.f32.mrf.mxu2 }
  0xc6   :  { %v362_v41 = vmax.f32 %v179_v38, 0.0  ;;  %225 = vmatmul.f32.gmra.mxu0 %v85_v36 }
  0xc8   :  { %v430_v43 = vsel %vm422_vm0, %v362_v41, 0.0 }
  0xc9   :  { %v431_v44 = vadd.f32 %v430_v43, %v429_v42  ;;  %v1701_v43 = vpop.f32.mrf.mxu3 }
  0xcb   :  { %v181_v45 = vpop.f32.mrf.mxu0  ;;  %v1669_v46 = vpop.f32.mrf.mxu1 }
  0xcc   :  { %v182_v48 = vadd.f32 %v1649_v17, %v181_v45  ;;  %v1672_v49 = vpop.f32.mrf.mxu2 }
  0xce   :  { %v363_v50 = vmax.f32 %v182_v48, 0.0  ;;  %228 = vmatmul.f32.gmra.mxu0 %v86_v47 }
  0xd0   :  { %v432_v51 = vsel %vm422_vm0, %v363_v50, 0.0 }
  0xd1   :  { %v433_v52 = vadd.f32 %v432_v51, %v431_v44 }
  0xd3   :  { %v184_v53 = vpop.f32.mrf.mxu0  ;;  %v262_v54 = vpop.f32.mrf.mxu1 }
  0xd4   :  { %v185_v57 = vadd.f32 %v1649_v17, %v184_v53  ;;  %v1678_v59 = vpop.f32.mrf.mxu2  ;;  %v263_v15 = vadd.f32 %v1649_v17, %v262_v54 }
  0xd6   :  { %v364_v58 = vmax.f32 %v185_v57, 0.0  ;;  %231 = vmatmul.f32.gmra.mxu0 %v87_v55  ;;  %v390_v23 = vmax.f32 %v263_v15, 0.0  ;;  %v290_v15 = vadd.f32 %v1649_v17, %v1666_v39 }
  0xd8   :  { %v434_v60 = vsel %vm422_vm0, %v364_v58, 0.0  ;;  %v492_v33 = vsel %vm422_vm0, %v390_v23, 0.0  ;;  %v281_v58 = vadd.f32 %v1649_v17, %v1640_v12  ;;  %v1717_v12 = vpop.f32.mrf.mxu3 }
  0xd9   :  { %v435_v61 = vadd.f32 %v434_v60, %v433_v52 }
  0xdb   :  { %v187_v62 = vpop.f32.mrf.mxu0  ;;  %v265_v63 = vpop.f32.mrf.mxu1 }
  0xdc   :  { %v188_v1 = vadd.f32 %v1649_v17, %v187_v62  ;;  %v1685_v5 = vpop.f32.mrf.mxu2  ;;  %v266_v18 = vadd.f32 %v1649_v17, %v265_v63  ;;  %v284_v63 = vadd.f32 %v1649_v17, %v1644_v16 }
  0xde   :  { %v365_v3 = vmax.f32 %v188_v1, 0.0  ;;  %234 = vmatmul.f32.gmra.mxu0 %v88_v0  ;;  %v391_v25 = vmax.f32 %v266_v18, 0.0  ;;  %v396_v1 = vmax.f32 %v281_v58, 0.0 }
  0xe0   :  { %v436_v4 = vsel %vm422_vm0, %v365_v3, 0.0  ;;  %v493_v34 = vsel %vm422_vm0, %v391_v25, 0.0 }
  0xe1   :  { %v437_v6 = vadd.f32 %v436_v4, %v435_v61  ;;  %v494_v41 = vadd.f32 %v493_v34, %v492_v33 }
  0xe3   :  { %v190_v8 = vpop.f32.mrf.mxu0  ;;  %v268_v9 = vpop.f32.mrf.mxu1 }
  0xe4   :  { %v191_v13 = vadd.f32 %v1649_v17, %v190_v8  ;;  %v269_v27 = vadd.f32 %v1649_v17, %v268_v9  ;;  %v1694_v28 = vpop.f32.mrf.mxu2 }
  0xe6   :  { %v366_v19 = vmax.f32 %v191_v13, 0.0  ;;  %237 = vmatmul.f32.gmra.mxu0 %v89_v11  ;;  %v392_v36 = vmax.f32 %v269_v27, 0.0  ;;  %v397_v13 = vmax.f32 %v284_v63, 0.0 }
  0xe8   :  { %v438_v21 = vsel %vm422_vm0, %v366_v19, 0.0  ;;  %v495_v44 = vsel %vm422_vm0, %v392_v36, 0.0  ;;  %v503_v19 = vsel %vm422_vm0, %v396_v1, 0.0  ;;  %v505_v39 = vsel %vm422_vm0, %v397_v13, 0.0 }
  0xe9   :  { %v439_v24 = vadd.f32 %v438_v21, %v437_v6  ;;  %v496_v52 = vadd.f32 %v495_v44, %v494_v41  ;;  %v287_v6 = vadd.f32 %v1649_v17, %v1657_v26  ;;  %v293_v26 = vadd.f32 %v1649_v17, %v1672_v49 }
  0xea   :  { %v302_v44 = vadd.f32 %v1649_v17, %v1694_v28 }
  0xeb   :  { %v193_v29 = vpop.f32.mrf.mxu0  ;;  %v271_v30 = vpop.f32.mrf.mxu1  ;;  %v398_v23 = vmax.f32 %v287_v6, 0.0  ;;  %v400_v36 = vmax.f32 %v293_v26, 0.0 }
  0xec   :  { %v194_v32 = vadd.f32 %v1649_v17, %v193_v29  ;;  %v272_v38 = vadd.f32 %v1649_v17, %v271_v30  ;;  %v304_v53 = vpop.f32.mrf.mxu2  ;;  %v566_v30 = vld [vmem:[%s2047_s6 + $0x18] sm:$0xff]  ;;  %v403_v58 = vmax.f32 %v302_v44, 0.0 }
  0xed   :  { %589 = vmatpush.msrb.mxu0 %v566_v30  ;;  %v507_v49 = vsel %vm422_vm0, %v398_v23, 0.0  ;;  %v320_v23 = vadd.f32 %v1649_v17, %v1690_v20 }
  0xee   :  { %v367_v37 = vmax.f32 %v194_v32, 0.0  ;;  %240 = vmatmul.f32.gmra.mxu0 %v90_v31  ;;  %v393_v45 = vmax.f32 %v272_v38, 0.0  ;;  %v399_v31 = vmax.f32 %v290_v15, 0.0  ;;  %v296_v32 = vadd.f32 %v1649_v17, %v1678_v59  ;;  %v1739_v59 = vpop.f32.mrf.mxu3 }
  0xf0   :  { %v440_v40 = vsel %vm422_vm0, %v367_v37, 0.0  ;;  %v497_v54 = vsel %vm422_vm0, %v393_v45, 0.0  ;;  %v299_v37 = vadd.f32 %v1649_v17, %v1685_v5  ;;  %v509_v41 = vsel %vm422_vm0, %v399_v31, 0.0 }
  0xf1   :  { %v441_v42 = vadd.f32 %v440_v40, %v439_v24  ;;  %v498_v61 = vadd.f32 %v497_v54, %v496_v52 }
  0xf3   :  { %v196_v47 = vpop.f32.mrf.mxu0  ;;  %v274_v48 = vpop.f32.mrf.mxu1 }
  0xf4   :  { %v197_v50 = vadd.f32 %v1649_v17, %v196_v47  ;;  %v275_v51 = vadd.f32 %v1649_v17, %v274_v48  ;;  %v307_v21 = vpop.f32.mrf.mxu2  ;;  %v511_v48 = vsel %vm422_vm0, %v400_v36, 0.0 }
  0xf6   :  { %v368_v55 = vmax.f32 %v197_v50, 0.0  ;;  %v394_v57 = vmax.f32 %v275_v51, 0.0  ;;  %v402_v50 = vmax.f32 %v299_v37, 0.0  ;;  %v305_v51 = vadd.f32 %v1649_v17, %v304_v53 }
  0xf8   :  { %v442_v60 = vsel %vm422_vm0, %v368_v55, 0.0  ;;  %v499_v0 = vsel %vm422_vm0, %v394_v57, 0.0  ;;  %v404_v63 = vmax.f32 %v305_v51, 0.0  ;;  %v565_v51 = vld [vmem:[%s2047_s6 + $0x10] sm:$0xff] }
  0xf9   :  { %v443_v62 = vadd.f32 %v442_v60, %v441_v42  ;;  %v500_v11 = vadd.f32 %v499_v0, %v498_v61  ;;  %v401_v42 = vmax.f32 %v296_v32, 0.0  ;;  %v308_v60 = vadd.f32 %v1649_v17, %v307_v21  ;;  %590 = vmatpush.msrb.mxu0 %v565_v51  ;;  %v564_v51 = vld [vmem:[%s2047_s6 + $0x8] sm:$0xff] }
  0xfa   :  { %v317_v21 = vadd.f32 %v1649_v17, %v1682_v2  ;;  %v409_v32 = vmax.f32 %v320_v23, 0.0 }
  0xfb   :  { %v199_v3 = vpop.f32.mrf.mxu0  ;;  %v277_v4 = vpop.f32.mrf.mxu1  ;;  %v513_v57 = vsel %vm422_vm0, %v401_v42, 0.0  ;;  %591 = vmatpush.msrb.mxu0 %v564_v51 }
  0xfc   :  { %v200_v8 = vadd.f32 %v1649_v17, %v199_v3  ;;  %v278_v9 = vadd.f32 %v1649_v17, %v277_v4  ;;  %v310_v55 = vpop.f32.mrf.mxu2  ;;  %v517_v3 = vsel %vm422_vm0, %v403_v58, 0.0  ;;  %v405_v4 = vmax.f32 %v308_v60, 0.0 }
  0xfd   :  { %v311_v1 = vadd.f32 %v1649_v17, %v310_v55  ;;  %v408_v31 = vmax.f32 %v317_v21, 0.0  ;;  %v326_v58 = vadd.f32 %v1649_v17, %v1717_v12 }
  0xfe   :  { %v369_v16 = vmax.f32 %v200_v8, 0.0  ;;  %v395_v18 = vmax.f32 %v278_v9, 0.0  ;;  %v314_v9 = vadd.f32 %v1649_v17, %v1675_v56  ;;  %v521_v26 = vsel %vm422_vm0, %v405_v4, 0.0 }
  0xff   :  { %v406_v15 = vmax.f32 %v311_v1, 0.0  ;;  %v323_v56 = vadd.f32 %v1649_v17, %v1701_v43  ;;  %v529_v43 = vsel %vm422_vm0, %v409_v32, 0.0  ;;  %v411_v60 = vmax.f32 %v326_v58, 0.0 }
 0x100   :  { %v444_v24 = vsel %vm422_vm0, %v369_v16, 0.0  ;;  %v501_v25 = vsel %vm422_vm0, %v395_v18, 0.0  ;;  %v331_v16 = vpop.f32.mrf.mxu3 }
 0x101   :  { %v445_v27 = vadd.f32 %v444_v24, %v443_v62  ;;  %v502_v29 = vadd.f32 %v501_v25, %v500_v11  ;;  %v515_v62 = vsel %vm422_vm0, %v402_v50, 0.0  ;;  %v519_v11 = vsel %vm422_vm0, %v404_v63, 0.0 }
 0x102   :  { %v410_v20 = vmax.f32 %v323_v56, 0.0  ;;  %v533_v63 = vsel %vm422_vm0, %v411_v60, 0.0  ;;  %v332_v1 = vadd.f32 %v1649_v17, %v331_v16 }
 0x103   :  { %v504_v33 = vadd.f32 %v503_v19, %v502_v29  ;;  %v202_v34 = vpop.f32.mrf.mxu0  ;;  %v523_v29 = vsel %vm422_vm0, %v406_v15, 0.0 }
 0x104   :  { %v203_v38 = vadd.f32 %v1649_v17, %v202_v34  ;;  %v531_v44 = vsel %vm422_vm0, %v410_v20, 0.0  ;;  %v413_v4 = vmax.f32 %v332_v1, 0.0 }
 0x105   :  { %v506_v40 = vadd.f32 %v505_v39, %v504_v33 }
 0x106   :  { %v370_v45 = vmax.f32 %v203_v38, 0.0  ;;  %v527_v38 = vsel %vm422_vm0, %v408_v31, 0.0  ;;  %v537_v12 = vsel %vm422_vm0, %v413_v4, 0.0 }
 0x107   :  { %v508_v47 = vadd.f32 %v507_v49, %v506_v40 }
 0x108   :  { %v446_v5 = vsel %vm422_vm0, %v370_v45, 0.0  ;;  %v334_v40 = vpop.f32.mrf.mxu3 }
 0x109   :  { %v510_v52 = vadd.f32 %v509_v41, %v508_v47  ;;  %v447_v54 = vadd.f32 %v446_v5, %v445_v27  ;;  %v407_v27 = vmax.f32 %v314_v9, 0.0 }
 0x10b   :  { %v512_v28 = vadd.f32 %v511_v48, %v510_v52  ;;  %v205_v61 = vpop.f32.mrf.mxu0  ;;  %v525_v34 = vsel %vm422_vm0, %v407_v27, 0.0 }
 0x10c   :  { %v206_v0 = vadd.f32 %v1649_v17, %v205_v61 }
 0x10d   :  { %v514_v53 = vadd.f32 %v513_v57, %v512_v28  ;;  %v329_v28 = vadd.f32 %v1649_v17, %v1739_v59 }
 0x10e   :  { %v371_v6 = vmax.f32 %v206_v0, 0.0 }
 0x10f   :  { %v516_v8 = vadd.f32 %v515_v62, %v514_v53  ;;  %v412_v0 = vmax.f32 %v329_v28, 0.0 }
 0x110   :  { %v448_v13 = vsel %vm422_vm0, %v371_v6, 0.0  ;;  %v337_v50 = vpop.f32.mrf.mxu3  ;;  %v335_v6 = vadd.f32 %v1649_v17, %v334_v40 }
 0x111   :  { %v518_v18 = vadd.f32 %v517_v3, %v516_v8  ;;  %v449_v19 = vadd.f32 %v448_v13, %v447_v54  ;;  %v535_v3 = vsel %vm422_vm0, %v412_v0, 0.0  ;;  %v338_v59 = vadd.f32 %v1649_v17, %v337_v50 }
 0x113   :  { %v520_v24 = vadd.f32 %v519_v11, %v518_v18  ;;  %v208_v25 = vpop.f32.mrf.mxu0  ;;  %v414_v11 = vmax.f32 %v335_v6, 0.0 }
 0x114   :  { %v209_v30 = vadd.f32 %v1649_v17, %v208_v25 }
 0x115   :  { %v522_v39 = vadd.f32 %v521_v26, %v520_v24  ;;  %v539_v18 = vsel %vm422_vm0, %v414_v11, 0.0 }
 0x116   :  { %v372_v33 = vmax.f32 %v209_v30, 0.0 }
 0x117   :  { %v524_v2 = vadd.f32 %v523_v29, %v522_v39 }
 0x118   :  { %v450_v49 = vsel %vm422_vm0, %v372_v33, 0.0  ;;  %v340_v52 = vpop.f32.mrf.mxu3 }
 0x119   :  { %v526_v36 = vadd.f32 %v525_v34, %v524_v2  ;;  %v1765_v37 = vadd.f32 %v450_v49, %v449_v19  ;;  %v415_v19 = vmax.f32 %v338_v59, 0.0  ;;  %v341_v16 = vadd.f32 %v1649_v17, %v340_v52 }
 0x11b   :  { %v528_v41 = vadd.f32 %v527_v38, %v526_v36  ;;  %v211_v42 = vpop.f32.mrf.mxu0  ;;  %v541_v25 = vsel %vm422_vm0, %v415_v19, 0.0  ;;  %v416_v27 = vmax.f32 %v341_v16, 0.0 }
 0x11c   :  { %v212_v21 = vadd.f32 %v1649_v17, %v211_v42 }
 0x11d   :  { %v530_v45 = vadd.f32 %v529_v43, %v528_v41  ;;  %v543_v33 = vsel %vm422_vm0, %v416_v27, 0.0 }
 0x11e   :  { %v373_v29 = vmax.f32 %v212_v21, 0.0 }
 0x11f   :  { %v532_v47 = vadd.f32 %v531_v44, %v530_v45 }
 0x120   :  { %v343_v55 = vpop.f32.mrf.mxu3  ;;  %v452_v49 = vsel %vm422_vm0, %v373_v29, 0.0 }
 0x121   :  { %v534_v53 = vadd.f32 %v533_v63, %v532_v47  ;;  %v344_v23 = vadd.f32 %v1649_v17, %v343_v55  ;;  %v453_v50 = vadd.f32 %v452_v49, %v1765_v37 }
 0x123   :  { %v214_v48 = vpop.f32.mrf.mxu0  ;;  %v536_v8 = vadd.f32 %v535_v3, %v534_v53  ;;  %v417_v39 = vmax.f32 %v344_v23, 0.0 }
 0x124   :  { %v215_v56 = vadd.f32 %v1649_v17, %v214_v48 }
 0x125   :  { %v538_v15 = vadd.f32 %v537_v12, %v536_v8  ;;  %v545_v43 = vsel %vm422_vm0, %v417_v39, 0.0 }
 0x126   :  { %v374_v34 = vmax.f32 %v215_v56, 0.0 }
 0x127   :  { %v540_v26 = vadd.f32 %v539_v18, %v538_v15 }
 0x128   :  { %v346_v61 = vpop.f32.mrf.mxu3  ;;  %v454_v45 = vsel %vm422_vm0, %v374_v34, 0.0 }
 0x129   :  { %v542_v31 = vadd.f32 %v541_v25, %v540_v26  ;;  %v347_v2 = vadd.f32 %v1649_v17, %v346_v61  ;;  %v455_v60 = vadd.f32 %v454_v45, %v453_v50  ;;  %v257_v50 = vadd.f32 %v1649_v17, %v1662_v35 }
 0x12b   :  { %v217_v5 = vpop.f32.mrf.mxu0  ;;  %v544_v40 = vadd.f32 %v543_v33, %v542_v31  ;;  %v418_v44 = vmax.f32 %v347_v2, 0.0  ;;  %v248_v2 = vadd.f32 %v1649_v17, %v1638_v10 }
 0x12c   :  { %v218_v30 = vadd.f32 %v1649_v17, %v217_v5  ;;  %v563_v5 = vld [vmem:[%s2047_s6] sm:$0xff] }
 0x12d   :  { %v547_v37 = vsel %vm422_vm0, %v418_v44, 0.0  ;;  %592 = vmatpush.msrb.mxu0 %v563_v5  ;;  %v254_v44 = vadd.f32 %v1649_v17, %v1654_v22 }
 0x12e   :  { %v375_v36 = vmax.f32 %v218_v30, 0.0  ;;  %v245_v30 = vadd.f32 %v1649_v17, %v1636_v7 }
 0x130   :  { %v349_v13 = vpop.f32.mrf.mxu3  ;;  %v456_v52 = vsel %vm422_vm0, %v375_v36, 0.0 }
 0x131   :  { %v350_v41 = vadd.f32 %v1649_v17, %v349_v13  ;;  %v457_v0 = vadd.f32 %v456_v52, %v455_v60  ;;  %v387_v52 = vmax.f32 %v254_v44, 0.0 }
 0x133   :  { %v220_v54 = vpop.f32.mrf.mxu0  ;;  %v419_v58 = vmax.f32 %v350_v41, 0.0 }
 0x134   :  { %v221_v20 = vadd.f32 %v1649_v17, %v220_v54 }
 0x135   :  { %v549_v8 = vsel %vm422_vm0, %v419_v58, 0.0 }
 0x136   :  { %v376_v47 = vmax.f32 %v221_v20, 0.0 }
 0x138   :  { %v352_v32 = vpop.f32.mrf.mxu3  ;;  %v458_v61 = vsel %vm422_vm0, %v376_v47, 0.0 }
 0x139   :  { %v353_v28 = vadd.f32 %v1649_v17, %v352_v32  ;;  %v459_v12 = vadd.f32 %v458_v61, %v457_v0 }
 0x13b   :  { %v223_v57 = vpop.f32.mrf.mxu0 }
 0x13c   :  { %v224_v38 = vadd.f32 %v1649_v17, %v223_v57  ;;  %v546_v57 = vadd.f32 %v545_v43, %v544_v40  ;;  %v251_v43 = vadd.f32 %v1649_v17, %v1642_v14 }
 0x13e   :  { %v377_v54 = vmax.f32 %v224_v38, 0.0  ;;  %v548_v6 = vadd.f32 %v547_v37, %v546_v57  ;;  %v384_v38 = vmax.f32 %v245_v30, 0.0  ;;  %v388_v57 = vmax.f32 %v257_v50, 0.0  ;;  %v1351_v50 = vld [vmem:[%s2049_s8 + $0x38] sm:$0xff] }
 0x13f   :  { %790 = vmatpush.bf16.msrb.mxu3 %v1351_v50 }
 0x140   :  { %v355_v1 = vpop.f32.mrf.mxu3  ;;  %v460_v53 = vsel %vm422_vm0, %v377_v54, 0.0  ;;  %v550_v23 = vadd.f32 %v549_v8, %v548_v6  ;;  %v474_v47 = vsel %vm422_vm0, %v384_v38, 0.0  ;;  %v260_v54 = vadd.f32 %v1649_v17, %v1669_v46 }
 0x141   :  { %v356_v59 = vadd.f32 %v1649_v17, %v355_v1  ;;  %v461_v19 = vadd.f32 %v460_v53, %v459_v12  ;;  %v482_v35 = vsel %vm422_vm0, %v388_v57, 0.0  ;;  %v1348_v57 = vld [vmem:[%s2049_s8 + $0x20] sm:$0xff] }
 0x142   :  { %v389_v37 = vmax.f32 %v260_v54, 0.0  ;;  %v1349_v54 = vld [vmem:[%s2049_s8 + $0x28] sm:$0xff] }
 0x143   :  { %v226_v62 = vpop.f32.mrf.mxu0  ;;  %v421_v25 = vmax.f32 %v356_v59, 0.0 }
 0x144   :  { %v227_v48 = vadd.f32 %v1649_v17, %v226_v62  ;;  %v484_v0 = vsel %vm422_vm0, %v389_v37, 0.0  ;;  %v1346_v37 = vld [vmem:[%s2049_s8 + $0x10] sm:$0xff] }
 0x145   :  { %v553_v34 = vsel %vm422_vm0, %v421_v25, 0.0 }
 0x146   :  { %v378_v62 = vmax.f32 %v227_v48, 0.0  ;;  %v386_v48 = vmax.f32 %v251_v43, 0.0 }
 0x148   :  { %v462_v13 = vsel %vm422_vm0, %v378_v62, 0.0  ;;  %v478_v22 = vsel %vm422_vm0, %v386_v48, 0.0 }
 0x149   :  { %v463_v26 = vadd.f32 %v462_v13, %v461_v19  ;;  %v665_v19 = vld [vmem:[%s2042_s1 + $0x8] sm:$0xff] }
 0x14b   :  { %v229_v9 = vpop.f32.mrf.mxu0 }
 0x14c   :  { %v230_v55 = vadd.f32 %v1649_v17, %v229_v9  ;;  %v420_v9 = vmax.f32 %v353_v28, 0.0  ;;  %v480_v28 = vsel %vm422_vm0, %v387_v52, 0.0 }
 0x14e   :  { %v379_v3 = vmax.f32 %v230_v55, 0.0 }
 0x150   :  { %v464_v16 = vsel %vm422_vm0, %v379_v3, 0.0 }
 0x151   :  { %v465_v29 = vadd.f32 %v464_v16, %v463_v26  ;;  %v666_v16 = vld [vmem:[%s2042_s1 + $0x10] sm:$0xff] }
 0x153   :  { %v232_v24 = vpop.f32.mrf.mxu0 }
 0x154   :  { %v233_v63 = vadd.f32 %v1649_v17, %v232_v24  ;;  %v551_v24 = vsel %vm422_vm0, %v420_v9, 0.0 }
 0x155   :  { %v552_v31 = vadd.f32 %v551_v24, %v550_v23  ;;  %v1504_v23 = vmov 2.0   ;;  %v1421_v24 = vld [vmem:[%s2048_s7] ss:$0 sm:$0xff] }
 0x156   :  { %v380_v15 = vmax.f32 %v233_v63, 0.0  ;;  %1424 = vrcp.f32 %v1504_v23 }
 0x157   :  { %v554_v40 = vadd.f32 %v553_v34, %v552_v31  ;;  %v671_v34 = vld [vmem:[%s2042_s1 + $0x38] sm:$0xff] }
 0x158   :  { %v466_v27 = vsel %vm422_vm0, %v380_v15, 0.0  ;;  %v1503_v15 = vmov 0  }
 0x159   :  { %v467_v32 = vadd.f32 %v466_v27, %v465_v29  ;;  %v555_v51 = vrot.slane %v554_v40, 4  ;;  %1417 = vset.pattern.permute.xlu0 %v1503_v15  ;;  %1418 = vset.pattern.permute.xlu1 %v1503_v15 }
 0x15a   :  { %1419 = vset.pattern.permute.xlu2 %v1503_v15  ;;  %681 = vperm.xlu1 %1418, %v666_v16   ;;  %v1352_v16 = vld [vmem:[%s2050_s9] sm:$0xff] }
 0x15b   :  { %v235_v42 = vpop.f32.mrf.mxu0  ;;  %v556_v58 = vadd.f32 %v555_v51, %v554_v40 }
 0x15c   :  { %v236_v4 = vadd.f32 %v1649_v17, %v235_v42  ;;  %v385_v42 = vmax.f32 %v248_v2, 0.0  ;;  %v1425_v26 = vpop.eup %1424  ;;  %v668_v2 = vld [vmem:[%s2042_s1 + $0x20] sm:$0xff] }
 0x15d   :  { %v557_v62 = vrot.slane %v556_v58, 2  ;;  %v606_v25 = vmul.f32 2.0, %v1425_v26  ;;  %687 = vperm.xlu2 %1419, %v668_v2   ;;  %vm610_vm3 = vweird.f32 %v1425_v26 }
 0x15e   :  { %v381_v21 = vmax.f32 %v236_v4, 0.0  ;;  %v476_v14 = vsel %vm422_vm0, %v385_v42, 0.0 }
 0x15f   :  { %v558_v53 = vadd.f32 %v557_v62, %v556_v58  ;;  %v607_v29 = vsub.f32 1.0, %v606_v25  ;;  %v1347_v58 = vld [vmem:[%s2049_s8 + $0x18] sm:$0xff] }
 0x160   :  { %v468_v39 = vsel %vm422_vm0, %v381_v21, 0.0  ;;  %v667_v21 = vld [vmem:[%s2042_s1 + $0x18] sm:$0xff] }
 0x161   :  { %v469_v36 = vadd.f32 %v468_v39, %v467_v32  ;;  %v559_v46 = vrot.slane %v558_v53, 1  ;;  %v608_v31 = vmul.f32 %v1425_v26, %v607_v29 }
 0x162   :  { %684 = vperm.xlu1 %1418, %v667_v21   ;;  %v1920_v21 = vld [vmem:[%s2052_s11 + $0x18] sm:$0xff] }
 0x163   :  { %v238_v11 = vpop.f32.mrf.mxu0  ;;  %v560_v8 = vadd.f32 %v559_v46, %v558_v53  ;;  %v1344_v53 = vld [vmem:[%s2049_s8] sm:$0xff] }
 0x164   :  { %v239_v18 = vadd.f32 %v1649_v17, %v238_v11  ;;  %v635_v46 = vld [vmem:[%s2044_s3] sm:$0xff]  ;;  %s1506_s3 = smov [#allocation6]  }
 0x165   :  { %v562_v59 = vmul.f32 0.00390625, %v560_v8 }
 0x166   :  { %v382_v56 = vmax.f32 %v239_v18, 0.0  ;;  %v664_v18 = vld [vmem:[%s2042_s1] sm:$0xff] }
 0x167   :  { %675 = vperm.xlu0 %1417, %v664_v18  }
 0x168   :  { %v470_v20 = vsel %vm422_vm0, %v382_v56, 0.0 }
 0x169   :  { %v471_v41 = vadd.f32 %v470_v20, %v469_v36  ;;  %v670_v20 = vld [vmem:[%s2042_s1 + $0x30] sm:$0xff] }
 0x16a   :  { %696 = vperm.xlu1 %1418, %v671_v34  }
 0x16b   :  { %v241_v33 = vpop.f32.mrf.mxu0 }
 0x16c   :  { %v242_v49 = vadd.f32 %v1649_v17, %v241_v33 }
 0x16e   :  { %v383_v7 = vmax.f32 %v242_v49, 0.0  ;;  %v609_v49 = vadd.f32 %v1425_v26, %v608_v31 }
 0x16f   :  { %678 = vperm.xlu0 %1417, %v665_v19  }
 0x170   :  { %v472_v10 = vsel %vm422_vm0, %v383_v7, 0.0  ;;  %v611_v43 = vsel %vm610_vm3, %v1425_v26, %v609_v49  ;;  %v1941_v49 = vld [vmem:[%s2052_s11 + $0x8] sm:$0xff] }
 0x171   :  { %v473_v45 = vadd.f32 %v472_v10, %v471_v41  ;;  %v669_v41 = vld [vmem:[%s2042_s1 + $0x28] sm:$0xff] }
 0x172   :  { %690 = vperm.xlu2 %1419, %v669_v41  }
 0x173   :  { %v475_v5 = vadd.f32 %v474_v47, %v473_v45 }
 0x175   :  { %v477_v55 = vadd.f32 %v476_v14, %v475_v5  ;;  %v1350_v5 = vld [vmem:[%s2049_s8 + $0x30] sm:$0xff] }
 0x176   :  { %791 = vmatpush.bf16.msrb.mxu3 %v1350_v5 }
 0x177   :  { %v479_v60 = vadd.f32 %v478_v22, %v477_v55  ;;  %693 = vperm.xlu0 %1417, %v670_v20   ;;  %v1933_v20 = vld [vmem:[%s2052_s11 + $0x10] sm:$0xff] }
 0x179   :  { %v481_v61 = vadd.f32 %v480_v28, %v479_v60 }
 0x17a   :  { %792 = vmatpush.bf16.msrb.mxu3 %v1349_v54 }
 0x17b   :  { %v483_v63 = vadd.f32 %v482_v35, %v481_v61  ;;  %v1353_v61 = vld [vmem:[%s2050_s9 + $0x8] sm:$0xff]  ;;  %s1223_s9 = sshll.u32 %s2055_s14, 4  ;;  %s1224_s9 = int_to_ptr.hbm [resolvable:$true] %s1223_s9 }
 0x17c   :  { %894 = vmatpush.bf16.msrb.mxu1 %v1353_v61 }
 0x17d   :  { %v485_v1 = vadd.f32 %v484_v0, %v483_v63  ;;  %v1345_v63 = vld [vmem:[%s2049_s8 + $0x8] sm:$0xff]  ;;  %s1221_s8 = sshll.u32 %s1506_s3, 4  ;;  %s1222_s8 = int_to_ptr.vmem [resolvable:$true] %s1221_s8 }
 0x17e   :  { %793 = vmatpush.bf16.msrb.mxu3 %v1348_v57 }
 0x17f   :  { %v486_v3 = vrot.slane %v485_v1, 4 }
 0x180   :  { %895 = vmatpush.bf16.msrb.mxu1 %v1352_v16 }
 0x181   :  { %v487_v17 = vadd.f32 %v486_v3, %v485_v1 }
 0x182   :  { %794 = vmatpush.bf16.msrb.mxu3 %v1347_v58 }
 0x183   :  { %v488_v4 = vrot.slane %v487_v17, 2 }
 0x184   :  { %947 = vmatpush.bf16.msra.mxu1 %v1920_v21 }
 0x185   :  { %v489_v6 = vadd.f32 %v488_v4, %v487_v17  ;;  %v672_v4 = vlaneseq }
 0x186   :  { %795 = vmatpush.bf16.msrb.mxu3 %v1346_v37 }
 0x187   :  { %v490_v9 = vrot.slane %v489_v6, 1  ;;  %v1904_v8 = vand.u32 127, %v672_v4 }
 0x188   :  { %948 = vmatpush.bf16.msra.mxu1 %v1933_v20 }
 0x189   :  { %v491_v12 = vadd.f32 %v490_v9, %v489_v6 }
 0x18a   :  { %796 = vmatpush.bf16.msrb.mxu3 %v1345_v63 }
 0x18b   :  { %v561_v11 = vmul.f32 0.00390625, %v491_v12  ;;  %v1505_v12 = vmov 1.0|1.0  }
 0x18c   :  { %949 = vmatpush.bf16.msra.mxu1 %v1941_v49 }
 0x18d   :  { %v574_v13 = vsel %vm573_vm1, %v562_v59, %v561_v11 }
 0x18e   :  { %1236 = vmatmul.msk.f32.vlgmr.msrb.gmra.mxu0 %vm422_vm0, %v574_v13  ;;  %797 = vmatpush.bf16.msrb.mxu3 %v1344_v53 }
 0x192   :  { %1087 = vmatpush.bf16.msra.mxu3 %v1920_v21 }
 0x196   :  { %1088 = vmatpush.bf16.msra.mxu3 %v1933_v20 }
 0x19a   :  { %1089 = vmatpush.bf16.msra.mxu3 %v1941_v49 }
 0x1b7   :  { %v688_v13 = vpop.permute.xlu2 %687 }
 0x1b8   :  { %vm702_vm15 = vcmp.eq.s32.totalorder %v688_v13, %v1904_v8 }
 0x1cc   :  { %v682_v11 = vpop.permute.xlu1 %681  ;;  %v691_v15 = vpop.permute.xlu2 %690 }
 0x1cd   :  { %vm700_vm12 = vcmp.eq.s32.totalorder %v682_v11, %v1904_v8  ;;  %vm703_vm1 = vcmp.eq.s32.totalorder %v691_v15, %v1904_v8 }
 0x1d4   :  { %v685_v59 = vpop.permute.xlu1 %684 }
 0x1d5   :  { %vm701_vm13 = vcmp.eq.s32.totalorder %v685_v59, %v1904_v8 }
 0x1d6   :  { %vm1281_vm14 = vmpackc.low %vm701_vm13, %vm700_vm12 }
 0x1d9   :  { %v676_v6 = vpop.permute.xlu0 %675 }
 0x1da   :  { %vm698_vm9 = vcmp.eq.s32.totalorder %v676_v6, %v1904_v8 }
 0x1dc   :  { %v697_v18 = vpop.permute.xlu1 %696 }
 0x1dd   :  { %vm705_vm3 = vcmp.eq.s32.totalorder %v697_v18, %v1904_v8 }
 0x1e1   :  { %v679_v9 = vpop.permute.xlu0 %678 }
 0x1e2   :  { %vm699_vm10 = vcmp.eq.s32.totalorder %v679_v9, %v1904_v8 }
 0x1e3   :  { %vm1279_vm11 = vmpackc.low %vm699_vm10, %vm698_vm9 }
 0x1e4   :  { %1280 = vmatmul.msk.bf16.vlgmr.msrb.gmra.mxu3 %vm1279_vm11, %v1505_v12 }
 0x1e9   :  { %v694_v19 = vpop.permute.xlu0 %693 }
 0x1f4   :  { %1282 = vmatmul.msk.bf16.gmra.mxu3 %vm1281_vm14, %v1505_v12 }
 0x20b   :  { %v594_v27 = vpop.f32.mrf.mxu0 }
 0x20c   :  { %v595_v56 = vadd.f32 %v1421_v24, %v594_v27 }
 0x20e   :  { %v598_v30 = vsel %vm597_vm2, %v595_v56, 0.0 }
 0x20f   :  { %v599_v39 = vrot.slane %v598_v30, 4 }
 0x211   :  { %v600_v32 = vadd.f32 %v599_v39, %v598_v30 }
 0x213   :  { %v601_v33 = vrot.slane %v600_v32, 2 }
 0x215   :  { %v602_v36 = vadd.f32 %v601_v33, %v600_v32 }
 0x217   :  { %v603_v38 = vrot.slane %v602_v36, 1 }
 0x219   :  { %v604_v7 = vadd.f32 %v603_v38, %v602_v36  ;;  %v1949_v36 = vld [vmem:[%s2052_s11] sm:$0xff] }
 0x21a   :  { %950 = vmatpush.bf16.msra.mxu1 %v1949_v36  ;;  %1090 = vmatpush.bf16.msra.mxu3 %v1949_v36  ;;  %v1965_v38 = vld [vmem:[%s2051_s10] ss:$0 sm:$0xff] }
 0x21b   :  { %v612_v40 = vmul.f32 %v611_v43, %v604_v7 }
 0x21d   :  { %v613_v42 = vsub.f32 %v595_v56, %v612_v40 }
 0x21f   :  { %v614_v44 = vmul.f32 %v613_v42, %v613_v42 }
 0x221   :  { %v615_v10 = vsel %vm597_vm2, %v614_v44, 0.0  ;;  %vm1283_vm2 = vmpackc.low %vm703_vm1, %vm702_vm15 }
 0x222   :  { %v616_v45 = vrot.slane %v615_v10, 4  ;;  %1284 = vmatmul.msk.bf16.gmra.mxu3 %vm1283_vm2, %v1505_v12 }
 0x224   :  { %v617_v47 = vadd.f32 %v616_v45, %v615_v10 }
 0x226   :  { %v618_v48 = vrot.slane %v617_v47, 2 }
 0x228   :  { %v619_v51 = vadd.f32 %v618_v48, %v617_v47 }
 0x22a   :  { %v620_v14 = vrot.slane %v619_v51, 1 }
 0x22c   :  { %v621_v52 = vadd.f32 %v620_v14, %v619_v51 }
 0x22e   :  { %v622_v55 = vmul.f32 %v621_v52, %v611_v43 }
 0x230   :  { %v623_v22 = vadd.f32 1e-05, %v622_v55 }
 0x232   :  { %1426 = vrsqrt.f32 %v623_v22  ;;  %vm630_vm5 = vweird.f32 %v623_v22 }
 0x238   :  { %v1427_v60 = vpop.eup %1426 }
 0x239   :  { %v625_v28 = vmul.f32 %v1427_v60, %v623_v22  ;;  %vm631_vm4 = vweird.f32 %v1427_v60 }
 0x23a   :  { %vm632_vm6 = vmor %vm630_vm5, %vm631_vm4  ;;  %vm704_vm4 = vcmp.eq.s32.totalorder %v694_v19, %v1904_v8 }
 0x23b   :  { %v626_v35 = vmul.f32 %v1427_v60, %v625_v28  ;;  %vm1285_vm5 = vmpackc.low %vm705_vm3, %vm704_vm4 }
 0x23c   :  { %1286 = vmatmul.msk.bf16.gmra.mxu3 %vm1285_vm5, %v1505_v12 }
 0x23d   :  { %v627_v62 = vmul.f32 0.5, %v626_v35 }
 0x23f   :  { %v628_v0 = vsub.f32 1.5, %v627_v62 }
 0x241   :  { %v629_v1 = vmul.f32 %v1427_v60, %v628_v0 }
 0x243   :  { %v633_v3 = vsel %vm632_vm6, %v1427_v60, %v629_v1  ;;  %vm913_vm6 = vcmask 523264  }
 0x244   :  { %v634_v17 = vmul.f32 %v633_v3, %v613_v42 }
 0x246   :  { %1237 = vmatpush.msk.msrb.mxu2 %vm640_vm7, %v634_v17  ;;  %vm1131_vm7 = vcmask 654336  }
 0x247   :  { %1238 = vmatmul.msk.f32.vlgmr.msrb.gmra.mxu2 %vm636_vm8, %v635_v46 }
 0x248   :  { %861 = vmatpush.bf16.msra.mxu2 %v1353_v61 }
 0x24c   :  { %862 = vmatpush.bf16.msra.mxu2 %v1352_v16 }
 0x250   :  { %1007 = vmatpush.bf16.msrb.mxu2 %v1920_v21 }
 0x254   :  { %1008 = vmatpush.bf16.msrb.mxu2 %v1933_v20 }
 0x258   :  { %1009 = vmatpush.bf16.msrb.mxu2 %v1941_v49 }
 0x25c   :  { %1010 = vmatpush.bf16.msrb.mxu2 %v1949_v36 }
 0x267   :  { %v799_v24 = vpop.f32.mrf.mxu3 }
 0x26f   :  { %v801_v25 = vpop.f32.mrf.mxu3 }
 0x270   :  { %v819_v27 = vpack.c.bf16 %v801_v25, %v799_v24 }
 0x272   :  { %1295 = vmatmul.msk.bf16.vlgmr.msra.gmra.mxu2 %vm422_vm0, %v819_v27 }
 0x273   :  { %1047 = vmatpush.bf16.msra.mxu2 %v1920_v21 }
 0x277   :  { %v804_v56 = vpop.f32.mrf.mxu3  ;;  %1048 = vmatpush.bf16.msra.mxu2 %v1933_v20 }
 0x27b   :  { %1049 = vmatpush.bf16.msra.mxu2 %v1941_v49 }
 0x27f   :  { %v806_v29 = vpop.f32.mrf.mxu3  ;;  %1050 = vmatpush.bf16.msra.mxu2 %v1949_v36 }
 0x280   :  { %v820_v30 = vpack.c.bf16 %v806_v29, %v804_v56 }
 0x282   :  { %1296 = vmatmul.msk.bf16.gmra.mxu2 %vm422_vm0, %v820_v30 }
 0x2a5   :  { %v809_v39 = vpop.f32.mrf.mxu3 }
 0x2ad   :  { %v811_v31 = vpop.f32.mrf.mxu3 }
 0x2ae   :  { %v821_v32 = vpack.c.bf16 %v811_v31, %v809_v39 }
 0x2b0   :  { %1297 = vmatmul.msk.bf16.gmra.mxu2 %vm422_vm0, %v821_v32 }
 0x2bf   :  { %v814_v33 = vpop.f32.mrf.mxu3 }
 0x2c7   :  { %v816_v2 = vpop.f32.mrf.mxu3 }
 0x2c8   :  { %v822_v34 = vpack.c.bf16 %v816_v2, %v814_v33 }
 0x2ca   :  { %v661_v23 = vpop.f32.mrf.mxu2  ;;  %1298 = vmatmul.msk.bf16.gmra.mxu2 %vm422_vm0, %v822_v34 }
 0x2cb   :  { %v884_v26 = vpack.c.bf16 %v661_v23, %v661_v23 }
 0x2cd   :  { %1299 = vmatmul.msk.bf16.vlgmr.msrb.gmra.mxu1 %vm422_vm0, %v884_v26  ;;  %vm911_vm0 = vcmp.lt.s32.totalorder %v1904_v8, 32 }
 0x2ce   :  { %967 = vmatpush.bf16.msrb.mxu1 %v1920_v21 }
 0x2d2   :  { %968 = vmatpush.bf16.msrb.mxu1 %v1933_v20 }
 0x2d6   :  { %969 = vmatpush.bf16.msrb.mxu1 %v1941_v49 }
 0x2da   :  { %970 = vmatpush.bf16.msrb.mxu1 %v1949_v36 }
 0x2f5   :  { %v864_v10 = vpop.f32.mrf.mxu2 }
 0x2f6   :  { %v865_v45 = vadd.f32 %v1965_v38, %v864_v10 }
 0x2fd   :  { %v866_v14 = vpop.f32.mrf.mxu2 }
 0x2fe   :  { %v867_v52 = vadd.f32 %v1965_v38, %v866_v14 }
 0x305   :  { %v869_v60 = vpop.f32.mrf.mxu2 }
 0x306   :  { %v870_v28 = vadd.f32 %v1965_v38, %v869_v60 }
 0x30d   :  { %v871_v0 = vpop.f32.mrf.mxu2 }
 0x30e   :  { %v872_v46 = vadd.f32 %v1965_v38, %v871_v0 }
 0x333   :  { %v874_v1 = vpop.f32.mrf.mxu2 }
 0x334   :  { %v875_v11 = vadd.f32 %v1965_v38, %v874_v1 }
 0x33b   :  { %v876_v53 = vpop.f32.mrf.mxu2 }
 0x33c   :  { %v877_v16 = vadd.f32 %v1965_v38, %v876_v53 }
 0x34a   :  { %v897_v43 = vpop.f32.mrf.mxu1 }
 0x34b   :  { %v898_v7 = vadd.f32 %v1965_v38, %v897_v43 }
 0x34d   :  { %1428 = vtanh.f32 %v898_v7  ;;  %v879_v3 = vpop.f32.mrf.mxu2 }
 0x34e   :  { %v880_v27 = vadd.f32 %v1965_v38, %v879_v3 }
 0x352   :  { %v899_v40 = vpop.f32.mrf.mxu1 }
 0x353   :  { %v1429_v41 = vpop.eup %1428 }
 0x354   :  { %v912_v42 = vsel %vm911_vm0, %v1429_v41, 0.0  ;;  %v1361_v41 = vld [vmem:[%s2053_s12 + $0x18] sm:$0xff] }
 0x355   :  { %914 = vst.msk [vmem:[#allocation2] sm:$0xff] %vm913_vm6, %v912_v42  ;;  %v915_v44 = vpack.c.bf16 %v912_v42, %v912_v42  ;;  %v881_v17 = vpop.f32.mrf.mxu2  ;;  %1205 = vmatpush.bf16.msrb.mxu3 %v1361_v41 }
 0x356   :  { %v882_v32 = vadd.f32 %v1965_v38, %v881_v17 }
 0x357   :  { %1316 = vmatmul.msk.bf16.vlgmr.msra.gmra.mxu1 %vm913_vm6, %v915_v44 }
 0x358   :  { %987 = vmatpush.bf16.msra.mxu1 %v1920_v21 }
 0x35c   :  { %988 = vmatpush.bf16.msra.mxu1 %v1933_v20  ;;  %v1121_v14 = vld [vmem:[#allocation2] sm:$0xff] }
 0x360   :  { %989 = vmatpush.bf16.msra.mxu1 %v1941_v49 }
 0x364   :  { %990 = vmatpush.bf16.msra.mxu1 %v1949_v36 }
 0x3d4   :  { %v952_v47 = vpop.f32.mrf.mxu1 }
 0x3d5   :  { %v956_v48 = vadd.f32 %v952_v47, %v865_v45 }
 0x3d7   :  { %1430 = vtanh.f32 %v956_v48 }
 0x3dc   :  { %v954_v50 = vpop.f32.mrf.mxu1 }
 0x3dd   :  { %v1431_v51 = vpop.eup %1430 }
 0x3de   :  { %958 = vst.msk [vmem:[#allocation2 + $0x8] sm:$0xff] %vm913_vm6, %v1431_v51  ;;  %v959_v5 = vpack.c.bf16 %v1431_v51, %v1431_v51 }
 0x3e0   :  { %1317 = vmatmul.msk.bf16.vlgmr.msrb.gmra.mxu1 %vm913_vm6, %v959_v5  ;;  %v1119_v5 = vld [vmem:[%s2043_s2] sm:$0xff] }
 0x3e1   :  { %1027 = vmatpush.bf16.msrb.mxu1 %v1920_v21 }
 0x3e5   :  { %1028 = vmatpush.bf16.msrb.mxu1 %v1933_v20  ;;  %v1122_v51 = vld [vmem:[#allocation2 + $0x8] sm:$0xff] }
 0x3e9   :  { %1029 = vmatpush.bf16.msrb.mxu1 %v1941_v49 }
 0x3ed   :  { %1030 = vmatpush.bf16.msrb.mxu1 %v1949_v36 }
 0x45d   :  { %v972_v54 = vpop.f32.mrf.mxu1 }
 0x45e   :  { %v976_v55 = vadd.f32 %v972_v54, %v867_v52  ;;  %v1120_v52 = vld [vmem:[%s2043_s2 + $0x8] sm:$0xff]  ;;  %v1360_v54 = vld [vmem:[%s2053_s12 + $0x10] sm:$0xff] }
 0x45f   :  { %1206 = vmatpush.bf16.msrb.mxu3 %v1360_v54 }
 0x460   :  { %1432 = vtanh.f32 %v976_v55  ;;  %v1359_v55 = vld [vmem:[%s2053_s12 + $0x8] sm:$0xff] }
 0x463   :  { %1207 = vmatpush.bf16.msrb.mxu3 %v1359_v55 }
 0x465   :  { %v974_v22 = vpop.f32.mrf.mxu1 }
 0x466   :  { %v1433_v57 = vpop.eup %1432  ;;  %v1358_v22 = vld [vmem:[%s2053_s12] sm:$0xff] }
 0x467   :  { %978 = vst.msk [vmem:[#allocation2 + $0x10] sm:$0xff] %vm913_vm6, %v1433_v57  ;;  %v979_v58 = vpack.c.bf16 %v1433_v57, %v1433_v57  ;;  %1208 = vmatpush.bf16.msrb.mxu3 %v1358_v22 }
 0x469   :  { %1318 = vmatmul.msk.bf16.vlgmr.msra.gmra.mxu1 %vm913_vm6, %v979_v58 }
 0x46a   :  { %1067 = vmatpush.bf16.msra.mxu1 %v1920_v21 }
 0x46e   :  { %1068 = vmatpush.bf16.msra.mxu1 %v1933_v20  ;;  %v1123_v50 = vld [vmem:[#allocation2 + $0x10] sm:$0xff] }
 0x472   :  { %1069 = vmatpush.bf16.msra.mxu1 %v1941_v49 }
 0x476   :  { %1070 = vmatpush.bf16.msra.mxu1 %v1949_v36 }
 0x4e6   :  { %v992_v37 = vpop.f32.mrf.mxu1 }
 0x4e7   :  { %v996_v61 = vadd.f32 %v992_v37, %v870_v28  ;;  %v1423_v28 = vld [vmem:[%s2054_s13] ss:$0 sm:$0xff] }
 0x4e9   :  { %1434 = vtanh.f32 %v996_v61 }
 0x4ee   :  { %v994_v35 = vpop.f32.mrf.mxu1 }
 0x4ef   :  { %v1435_v62 = vpop.eup %1434 }
 0x4f0   :  { %998 = vst.msk [vmem:[#allocation2 + $0x18] sm:$0xff] %vm913_vm6, %v1435_v62  ;;  %v999_v63 = vpack.c.bf16 %v1435_v62, %v1435_v62 }
 0x4f2   :  { %1319 = vmatmul.msk.bf16.vlgmr.msrb.gmra.mxu2 %vm913_vm6, %v999_v63 }
 0x4f3   :  { %1107 = vmatpush.bf16.msrb.mxu2 %v1920_v21 }
 0x4f7   :  { %1108 = vmatpush.bf16.msrb.mxu2 %v1933_v20  ;;  %v1124_v48 = vld [vmem:[#allocation2 + $0x18] sm:$0xff] }
 0x4fb   :  { %1109 = vmatpush.bf16.msrb.mxu2 %v1941_v49 }
 0x4ff   :  { %1110 = vmatpush.bf16.msrb.mxu2 %v1949_v36 }
 0x575   :  { %v1012_v4 = vpop.f32.mrf.mxu2 }
 0x576   :  { %v1016_v6 = vadd.f32 %v1012_v4, %v872_v46 }
 0x578   :  { %1436 = vtanh.f32 %v1016_v6 }
 0x57d   :  { %v1014_v8 = vpop.f32.mrf.mxu2 }
 0x57e   :  { %v1437_v9 = vpop.eup %1436 }
 0x57f   :  { %1018 = vst.msk [vmem:[#allocation2 + $0x20] sm:$0xff] %vm913_vm6, %v1437_v9  ;;  %v1019_v12 = vpack.c.bf16 %v1437_v9, %v1437_v9 }
 0x581   :  { %1320 = vmatmul.msk.bf16.vlgmr.msrb.gmra.mxu1 %vm913_vm6, %v1019_v12 }
 0x5fe   :  { %v1032_v59 = vpop.f32.mrf.mxu1 }
 0x5ff   :  { %v1036_v13 = vadd.f32 %v1032_v59, %v875_v11 }
 0x601   :  { %1438 = vtanh.f32 %v1036_v13 }
 0x606   :  { %v1034_v15 = vpop.f32.mrf.mxu1 }
 0x607   :  { %v1439_v18 = vpop.eup %1438 }
 0x608   :  { %1038 = vst.msk [vmem:[#allocation2 + $0x28] sm:$0xff] %vm913_vm6, %v1439_v18  ;;  %v1039_v19 = vpack.c.bf16 %v1439_v18, %v1439_v18 }
 0x60a   :  { %1321 = vmatmul.msk.bf16.vlgmr.msra.gmra.mxu2 %vm913_vm6, %v1039_v19 }
 0x60f   :  { %v1126_v47 = vld [vmem:[#allocation2 + $0x28] sm:$0xff] }
 0x68d   :  { %v1052_v21 = vpop.f32.mrf.mxu2 }
 0x68e   :  { %v1056_v23 = vadd.f32 %v1052_v21, %v877_v16 }
 0x690   :  { %1440 = vtanh.f32 %v1056_v23 }
 0x695   :  { %v1054_v26 = vpop.f32.mrf.mxu2 }
 0x696   :  { %v1441_v24 = vpop.eup %1440 }
 0x697   :  { %1058 = vst.msk [vmem:[#allocation2 + $0x30] sm:$0xff] %vm913_vm6, %v1441_v24  ;;  %v1059_v25 = vpack.c.bf16 %v1441_v24, %v1441_v24 }
 0x699   :  { %1322 = vmatmul.msk.bf16.vlgmr.msra.gmra.mxu1 %vm913_vm6, %v1059_v25 }
 0x69e   :  { %v1127_v45 = vld [vmem:[#allocation2 + $0x30] sm:$0xff] }
 0x716   :  { %v1072_v56 = vpop.f32.mrf.mxu1 }
 0x717   :  { %v1076_v29 = vadd.f32 %v1072_v56, %v880_v27 }
 0x719   :  { %1442 = vtanh.f32 %v1076_v29 }
 0x71e   :  { %v1074_v30 = vpop.f32.mrf.mxu1 }
 0x71f   :  { %v1443_v39 = vpop.eup %1442 }
 0x720   :  { %1078 = vst.msk [vmem:[#allocation2 + $0x38] sm:$0xff] %vm913_vm6, %v1443_v39  ;;  %v1079_v31 = vpack.c.bf16 %v1443_v39, %v1443_v39 }
 0x722   :  { %1323 = vmatmul.msk.bf16.vlgmr.msra.gmra.mxu3 %vm913_vm6, %v1079_v31 }
 0x727   :  { %v1128_v10 = vld [vmem:[#allocation2 + $0x38] sm:$0xff] }
 0x7a5   :  { %v1092_v33 = vpop.f32.mrf.mxu3 }
 0x7a6   :  { %v1096_v2 = vadd.f32 %v1092_v33, %v882_v32 }
 0x7a8   :  { %1444 = vtanh.f32 %v1096_v2 }
 0x7ad   :  { %v1094_v34 = vpop.f32.mrf.mxu3 }
 0x7ae   :  { %v1445_v20 = vpop.eup %1444 }
 0x7af   :  { %1098 = vst.msk [vmem:[#allocation2 + $0x40] sm:$0xff] %vm913_vm6, %v1445_v20  ;;  %v1099_v49 = vpack.c.bf16 %v1445_v20, %v1445_v20 }
 0x7b1   :  { %1324 = vmatmul.msk.bf16.vlgmr.msrb.gmra.mxu2 %vm913_vm6, %v1099_v49 }
 0x7b6   :  { %v1129_v44 = vld [vmem:[#allocation2 + $0x40] sm:$0xff] }
 0x834   :  { %v1112_v36 = vpop.f32.mrf.mxu2 }
 0x835   :  { %v1116_v43 = vadd.f32 %v1965_v38, %v1112_v36  ;;  %v1125_v38 = vld [vmem:[#allocation2 + $0x20] sm:$0xff] }
 0x837   :  { %1446 = vtanh.f32 %v1116_v43 }
 0x83c   :  { %v1114_v7 = vpop.f32.mrf.mxu2 }
 0x83d   :  { %v1447_v40 = vpop.eup %1446 }
 0x83e   :  { %1118 = vst.msk [vmem:[#allocation2 + $0x48] sm:$0xff] %vm913_vm6, %v1447_v40 }
 0x845   :  { %v1130_v42 = vld [vmem:[#allocation2 + $0x48] sm:$0xff] }
 0x846   :  { %1144 = vmatpush.msrb.mxu1 %v1130_v42 }
 0x848   :  { %1145 = vmatpush.msrb.mxu1 %v1129_v44 }
 0x84a   :  { %1146 = vmatpush.msrb.mxu1 %v1128_v10 }
 0x84c   :  { %1147 = vmatpush.msrb.mxu1 %v1127_v45 }
 0x84e   :  { %1148 = vmatpush.msrb.mxu1 %v1126_v47 }
 0x850   :  { %1149 = vmatpush.msrb.mxu1 %v1125_v38 }
 0x852   :  { %1150 = vmatpush.msrb.mxu1 %v1124_v48 }
 0x854   :  { %1151 = vmatpush.msrb.mxu1 %v1123_v50 }
 0x856   :  { %1152 = vmatpush.msrb.mxu1 %v1122_v51 }
 0x858   :  { %1153 = vmatpush.msrb.mxu1 %v1121_v14 }
 0x859   :  { %1325 = vmatmul.msk.f32.vlgmr.msrb.gmra.mxu1 %vm1131_vm7, %v1119_v5 }
 0x861   :  { %1326 = vmatmul.msk.f32.gmra.mxu1 %vm1131_vm7, %v1120_v52 }
 0x8d6   :  { %v1155_v57 = vpop.f32.mrf.mxu1 }
 0x8de   :  { %v1158_v58 = vpop.f32.mrf.mxu1 }
 0x8df   :  { %v1161_v60 = vpack.c.bf16 %v1158_v58, %v1155_v57 }
 0x8e1   :  { %1343 = vmatmul.msk.bf16.vlgmr.msrb.gmra.mxu3 %vm913_vm6, %v1161_v60 }
 0x964   :  { %v1210_v37 = vpop.f32.mrf.mxu3 }
 0x965   :  { %v1211_v61 = vadd.f32 %v1423_v28, %v1210_v37 }
 0x967   :  { %1215 = vst [vmem:[#allocation6] sm:$0xff] %v1211_v61 }
 0x96c   :  { %v1212_v35 = vpop.f32.mrf.mxu3 }
 0x96d   :  { %v1213_v62 = vadd.f32 %v1423_v28, %v1212_v35 }
 0x96f   :  { %1216 = vst [vmem:[#allocation6 + $0x8] sm:$0xff] %v1213_v62 }
 0x970   :  { %1229 = dma.vmem_to_hbm [thread:$0]  %s1222_s8, 256, %s1224_s9, [#allocation5], %s1501_s18, %s1501_s18, %s1502_s19  }
 0x971   :  { %1498 = dma.done.wait [#allocation5], 256  }
 0x972   :  { %1499 = vsyncadd [#allocation5], 4294967040 }
 0x973   :  { %1234 = vsyncpa [#allocation4], 1 }
 0x974   :  { %1235 = vsyncpa [#allocation5], 1 }

</bundles_post_ra>
